<compile_context>
chip_gen: v5e
topology: v5e:2x2
jax: 0.10.0
libtpu: 0.0.40
codegen_flags: <defaults>
</compile_context>

<pallas_src>
import jax
import jax.numpy as jnp
from jax import lax
from jax.experimental import pallas as pl
from jax.experimental.pallas import tpu as pltpu


_BN_SCALE = 1.0 / (1.0 + 1e-5) ** 0.5   # eval-mode BatchNorm1d, default stats
_MXU_DTYPE = jnp.bfloat16                # matmul operand dtype (f32 accumulation)

W_NAMES = ("gw1", "gw2", "gwh", "iw1", "iw2", "iw3",
           "xw1", "xw2", "xw3", "dw1", "dw2", "dw3")
B_NAMES = ("gb1", "gb2", "gbh", "ib1", "ib2", "ib3",
           "xb1", "xb2", "xb3", "db1", "db2", "db3")


# ----------------------------------------------------------------------------
# in-kernel helpers (traced inside the Pallas kernel)
# ----------------------------------------------------------------------------

def _mm(a, b):
    """MXU matmul: bf16 operands, f32 accumulation."""
    return jnp.dot(a.astype(_MXU_DTYPE), b.astype(_MXU_DTYPE),
                   preferred_element_type=jnp.float32)


def _gram(z):
    """Z @ Z.T without materializing the transpose (contract dim 1 with dim 1)."""
    zb = z.astype(_MXU_DTYPE)
    return lax.dot_general(zb, zb, (((1,), (1,)), ((), ())),
                           preferred_element_type=jnp.float32)


def _softplus(x):
    return jnp.maximum(x, 0.0) + jnp.log1p(jnp.exp(-jnp.abs(x)))


def _sigmoid_eup(x):
    """sigmoid(x) = 0.5*tanh(0.5*x)+0.5 : stays on the EUP slot, no exact divide."""
    return 0.5 * jnp.tanh(0.5 * x) + 0.5


def _mlp3(z, w1, b1, w2, b2, w3, b3, *, final_softmax):
    """Linear+ReLU, Linear+ReLU, Linear [+Softmax(dim=-1)].

    Covers FeatureEncoder (final_softmax=False) and FeatureDecoder (True).
    """
    h = jnp.maximum(_mm(z, w1) + b1, 0.0)
    h = jnp.maximum(_mm(h, w2) + b2, 0.0)
    o = _mm(h, w3) + b3
    if final_softmax:
        o = o - jnp.max(o, axis=-1, keepdims=True)
        e = jnp.exp(o)
        # exact reciprocal: approx=True (~2^-12 rel err) would break the 1e-5
        # row-sum tolerance on the softmax outputs; these tensors are tiny.
        o = e * pl.reciprocal(jnp.sum(e, axis=-1, keepdims=True), approx=False)
    return o


# ----------------------------------------------------------------------------
# Kernel builder: GraphEncoder + ig_encoder + batched x_decoder + ix_decoder
#                 + 2x InnerProductDecoder, single launch.
# Static metadata (weight/bias slab offsets, dims) is baked in via closure.
# ----------------------------------------------------------------------------

def build_kernel(n, meta, slab_w):
    (f_in, hid, lat, idim), w_offs, b_offs = meta

    def W(ref, name):
        r0, nr, nc = w_offs[W_NAMES.index(name)]
        return ref[r0:r0 + nr, :nc]            # static slice of bf16 weight slab

    def B(ref, name):
        j, nc = b_offs[B_NAMES.index(name)]
        return ref[j:j + 1, :nc]                # static slice of f32 bias slab

    def kernel(a_ref, x_ref, eps_ref, w_ref, b_ref,
               slab_ref, pred_a_ref, pred_ia_ref):
        a = a_ref[...]                           # (N, N) bf16 normalized adjacency
        x = x_ref[...]                           # (N, F_in) bf16 node features

        # ---- GraphEncoder: GCN layer 1 (BN eval-scale pre-folded; dropout=id) ----
        if f_in <= hid:                          # contract the N^2 term over narrower dim
            h = _mm(_mm(a, x), W(w_ref, "gw1")) + B(b_ref, "gb1")
        else:
            h = _mm(a, _mm(x, W(w_ref, "gw1"))) + B(b_ref, "gb1")
        h = jnp.maximum(h, 0.0)
        residual = h

        # ---- GCN layer 2 (BN folded) + residual ----
        h = _mm(a, _mm(h, W(w_ref, "gw2"))) + B(b_ref, "gb2")
        h = jnp.maximum(h, 0.0) + residual

        # ---- packed mean/logvar heads: one (H,2L) matmul + one (N,2L) A-matmul ----
        heads = _mm(a, _mm(h, W(w_ref, "gwh"))) + B(b_ref, "gbh")   # (N, 2L)
        q_m = heads[:, :lat]
        q_s = heads[:, lat:]                     # raw logvar-head output (pre-softplus)

        std = _softplus(q_s) + 1e-6
        q_z = q_m + std * eps_ref[...]           # reparameterized sample, f32

        # ---- ig_encoder (FeatureEncoder): q_z -> i_q_z ----
        i_q_z = _mlp3(q_z,
                      W(w_ref, "iw1"), B(b_ref, "ib1"),
                      W(w_ref, "iw2"), B(b_ref, "ib2"),
                      W(w_ref, "iw3"), B(b_ref, "ib3"),
                      final_softmax=False)

        # ---- ix_decoder (FeatureDecoder, softmax): i_q_z -> pred_q_z ----
        pred_q_z = _mlp3(i_q_z,
                         W(w_ref, "dw1"), B(b_ref, "db1"),
                         W(w_ref, "dw2"), B(b_ref, "db2"),
                         W(w_ref, "dw3"), B(b_ref, "db3"),
                         final_softmax=True)

        # ---- x_decoder run ONCE on rows [q_z ; pred_q_z]: pred_x / pred_ix ----
        zz = jnp.concatenate([q_z, pred_q_z], axis=0)               # (2N, L)
        px = _mlp3(zz,
                   W(w_ref, "xw1"), B(b_ref, "xb1"),
                   W(w_ref, "xw2"), B(b_ref, "xb2"),
                   W(w_ref, "xw3"), B(b_ref, "xb3"),
                   final_softmax=True)
        pred_x = px[:n]
        pred_ix = px[n:]

        # ---- lane-dense packed output slab: [q_m|q_s|q_z|i_q_z|pred_x|pred_ix|0] ----
        used = 3 * lat + idim + 2 * f_in
        parts = [heads, q_z, i_q_z, pred_x, pred_ix]
        if slab_w > used:
            parts.append(jnp.zeros((n, slab_w - used), jnp.float32))
        slab_ref[...] = jnp.concatenate(parts, axis=1)              # one full-width store

        # ---- InnerProduct adjacency decoders (sigmoid via EUP tanh path) ----
        pred_a_ref[...] = _sigmoid_eup(_gram(q_z))
        pred_ia_ref[...] = _sigmoid_eup(_gram(pred_q_z))

    return kernel


# ----------------------------------------------------------------------------
# Parameter init / host-side packing
# ----------------------------------------------------------------------------

def xavier(key, fan_in, fan_out):
    limit = (6.0 / (fan_in + fan_out)) ** 0.5
    return jax.random.uniform(key, (fan_in, fan_out), jnp.float32, -limit, limit)


def init_gcn_encoder(key, input_dim, hidden_dim, latent_dim):
    ks = jax.random.split(key, 4)
    return {
        "w1": xavier(ks[0], input_dim, hidden_dim),
        "b1": jnp.zeros((1, hidden_dim), jnp.float32),
        "w2": xavier(ks[1], hidden_dim, hidden_dim),
        "b2": jnp.zeros((1, hidden_dim), jnp.float32),
        "wm": xavier(ks[2], hidden_dim, latent_dim),
        "bm": jnp.zeros((1, latent_dim), jnp.float32),
        "wl": xavier(ks[3], hidden_dim, latent_dim),
        "bl": jnp.zeros((1, latent_dim), jnp.float32),
    }


def init_mlp3(key, in_dim, hidden_dim, out_dim):
    ks = jax.random.split(key, 3)
    return {
        "w1": xavier(ks[0], in_dim, hidden_dim),
        "b1": jnp.zeros((1, hidden_dim), jnp.float32),
        "w2": xavier(ks[1], hidden_dim, hidden_dim),
        "b2": jnp.zeros((1, hidden_dim), jnp.float32),
        "w3": xavier(ks[2], hidden_dim, out_dim),
        "b3": jnp.zeros((1, out_dim), jnp.float32),
    }


def pack_weight_slab(weights):
    """Pack all weight matrices into one bf16 (R, max_out) slab, 8-row aligned."""
    cols = max(int(w.shape[1]) for w in weights.values())
    blocks, offs, r = [], [], 0
    for name in W_NAMES:
        w = weights[name]
        nr, nc = int(w.shape[0]), int(w.shape[1])
        nr_pad = ((nr + 7) // 8) * 8
        blk = jnp.zeros((nr_pad, cols), jnp.float32).at[:nr, :nc].set(w)
        blocks.append(blk)
        offs.append((r, nr, nc))
        r += nr_pad
    slab = jnp.concatenate(blocks, axis=0).astype(_MXU_DTYPE)
    return slab, tuple(offs)


def pack_bias_slab(biases):
    """Pack all bias rows into one f32 (num_biases, max_out) slab."""
    cols = max(int(b.shape[1]) for b in biases.values())
    slab = jnp.zeros((len(B_NAMES), cols), jnp.float32)
    offs = []
    for j, name in enumerate(B_NAMES):
        b = biases[name]
        nc = int(b.shape[1])
        slab = slab.at[j, :nc].set(b[0])
        offs.append((j, nc))
    return slab, tuple(offs)


def prepare_fused_params(raw):
    """Fold BN eval-scale into GCN layers 1/2, pack mean/logvar heads, build slabs."""
    g, ig, xd, ixd = (raw["g_encoder"], raw["ig_encoder"],
                      raw["x_decoder"], raw["ix_decoder"])
    s = jnp.float32(_BN_SCALE)
    weights = {
        "gw1": g["w1"] * s, "gw2": g["w2"] * s,
        "gwh": jnp.concatenate([g["wm"], g["wl"]], axis=1),          # (H, 2L)
        "iw1": ig["w1"], "iw2": ig["w2"], "iw3": ig["w3"],
        "xw1": xd["w1"], "xw2": xd["w2"], "xw3": xd["w3"],
        "dw1": ixd["w1"], "dw2": ixd["w2"], "dw3": ixd["w3"],
    }
    biases = {
        "gb1": g["b1"] * s, "gb2": g["b2"] * s,
        "gbh": jnp.concatenate([g["bm"], g["bl"]], axis=1),          # (1, 2L)
        "ib1": ig["b1"], "ib2": ig["b2"], "ib3": ig["b3"],
        "xb1": xd["b1"], "xb2": xd["b2"], "xb3": xd["b3"],
        "db1": ixd["b1"], "db2": ixd["b2"], "db3": ixd["b3"],
    }
    w_slab, w_offs = pack_weight_slab(weights)
    b_slab, b_offs = pack_bias_slab(biases)
    f_in = int(weights["xw3"].shape[1])
    hid = int(weights["gw1"].shape[1])
    lat = int(weights["gwh"].shape[1]) // 2
    idim = int(weights["iw3"].shape[1])
    meta = ((f_in, hid, lat, idim), w_offs, b_offs)
    return w_slab, b_slab, meta


def gcn_normalized_adjacency(edge_index, edge_weight, num_nodes):
    """Dense D^{-1/2} (A + I) D^{-1/2}, A[dst, src] = edge_weight (PyG GCNConv)."""
    src, dst = edge_index[0], edge_index[1]
    a = jnp.zeros((num_nodes, num_nodes), jnp.float32)
    a = a.at[dst, src].add(edge_weight)
    a = a + jnp.eye(num_nodes, dtype=jnp.float32)      # self-loops, weight 1.0
    deg = jnp.sum(a, axis=1)
    dinv = jnp.where(deg > 0, 1.0 / jnp.sqrt(deg), 0.0)
    return dinv[:, None] * a * dinv[None, :]


# ----------------------------------------------------------------------------
# Full iGraphVAE forward (one pallas_call)
# ----------------------------------------------------------------------------

def igraph_vae_forward(x, edge_index, edge_weight, w_slab, b_slab, eps, meta):
    n = x.shape[0]
    (f_in, hid, lat, idim), _, _ = meta

    a_norm = gcn_normalized_adjacency(edge_index, edge_weight, n).astype(_MXU_DTYPE)
    x_bf = x.astype(_MXU_DTYPE)

    used = 3 * lat + idim + 2 * f_in
    slab_w = ((used + 127) // 128) * 128           # lane-dense packed output width

    kernel = build_kernel(n, meta, slab_w)

    args = (a_norm, x_bf, eps, w_slab, b_slab)
    out_shapes = (
        jax.ShapeDtypeStruct((n, slab_w), jnp.float32),   # [q_m|q_s|q_z|i_q_z|pred_x|pred_ix]
        jax.ShapeDtypeStruct((n, n), jnp.float32),        # pred_a
        jax.ShapeDtypeStruct((n, n), jnp.float32),        # pred_ia
    )

    # ---- cost / VMEM hints ----
    in_bytes = sum(a.size * a.dtype.itemsize for a in args)
    out_bytes = n * slab_w * 4 + 2 * n * n * 4
    flops = 2 * (
        n * n * f_in + n * f_in * hid                       # GCN layer 1
        + n * hid * hid + n * n * hid                       # GCN layer 2
        + n * hid * (2 * lat) + n * n * (2 * lat)           # mean/logvar heads
        + n * (lat * hid + hid * hid + hid * idim)          # ig_encoder
        + n * (idim * hid + hid * hid + hid * lat)          # ix_decoder
        + 2 * n * (lat * hid + hid * hid + hid * f_in)      # batched x_decoder
        + 2 * n * n * lat                                   # two grams
    )
    transcendentals = 2 * n * lat + 2 * n * f_in + 2 * n * n
    vmem_limit = int(min(64 * 1024 * 1024,
                         max(32 * 1024 * 1024, 4 * (in_bytes + out_bytes))))

    vmem_spec = pl.BlockSpec(memory_space=pltpu.MemorySpace.VMEM)
    fused = pl.pallas_call(
        kernel,
        out_shape=out_shapes,
        in_specs=[vmem_spec] * len(args),
        out_specs=tuple(vmem_spec for _ in out_shapes),
        compiler_params=pltpu.CompilerParams(vmem_limit_bytes=vmem_limit),
        cost_estimate=pl.CostEstimate(flops=flops,
                                      transcendentals=transcendentals,
                                      bytes_accessed=in_bytes + out_bytes),
    )
    slab, pred_a, pred_ia = fused(*args)

    q_m = slab[:, :lat]
    q_s = slab[:, lat:2 * lat]
    q_z = slab[:, 2 * lat:3 * lat]
    i_q_z = slab[:, 3 * lat:3 * lat + idim]
    pred_x = slab[:, 3 * lat + idim:3 * lat + idim + f_in]
    pred_ix = slab[:, 3 * lat + idim + f_in:3 * lat + idim + 2 * f_in]
    return q_z, q_m, q_s, pred_a, pred_x, i_q_z, pred_ia, pred_ix


# ----------------------------------------------------------------------------
# Main
# ----------------------------------------------------------------------------

if __name__ == "__main__":
    # small shapes
    N = 32            # num_nodes
    INPUT_DIM = 16
    HIDDEN_DIM = 32
    LATENT_DIM = 8
    IDIM = 4

    key = jax.random.PRNGKey(0)
    k_x, k_w, k_ge, k_ig, k_xd, k_ixd, k_eps = jax.random.split(key, 7)

    # node features
    x = jax.random.normal(k_x, (N, INPUT_DIM), jnp.float32)

    # bidirectional ring graph: 2*N edges (no self-loops)
    idx = jnp.arange(N)
    src = jnp.concatenate([idx, (idx + 1) % N])
    dst = jnp.concatenate([(idx + 1) % N, idx])
    edge_index = jnp.stack([src, dst])                         # (2, 64)
    edge_weight = jax.random.uniform(k_w, (2 * N,), jnp.float32, 0.5, 1.5)

    # parameters (raw, PyTorch-style layout) -> fused prep (BN fold + slab pack)
    raw_params = {
        "g_encoder":  init_gcn_encoder(k_ge, INPUT_DIM, HIDDEN_DIM, LATENT_DIM),
        "ig_encoder": init_mlp3(k_ig, LATENT_DIM, HIDDEN_DIM, IDIM),
        "x_decoder":  init_mlp3(k_xd, LATENT_DIM, HIDDEN_DIM, INPUT_DIM),
        "ix_decoder": init_mlp3(k_ixd, IDIM, HIDDEN_DIM, LATENT_DIM),
    }
    w_slab, b_slab, meta = prepare_fused_params(raw_params)

    # reparameterization noise (deterministic)
    eps = jax.random.normal(k_eps, (N, LATENT_DIM), jnp.float32)

    fwd = jax.jit(igraph_vae_forward, static_argnames=("meta",))
    outs = fwd(x, edge_index, edge_weight, w_slab, b_slab, eps, meta=meta)
    outs = jax.block_until_ready(outs)

    q_z, q_m, q_s, pred_a, pred_x, i_q_z, pred_ia, pred_ix = outs
    assert q_z.shape == (N, LATENT_DIM)
    assert q_m.shape == (N, LATENT_DIM)
    assert q_s.shape == (N, LATENT_DIM)
    assert pred_a.shape == (N, N)
    assert pred_x.shape == (N, INPUT_DIM)
    assert i_q_z.shape == (N, IDIM)
    assert pred_ia.shape == (N, N)
    assert pred_ix.shape == (N, INPUT_DIM)
    for o in outs:
        assert bool(jnp.all(jnp.isfinite(o)))
    # reparameterization consistency: q_z == q_m + (softplus(q_s) + 1e-6) * eps
    std_ref = jnp.logaddexp(q_s, 0.0) + 1e-6
    assert bool(jnp.allclose(q_z, q_m + std_ref * eps, atol=1e-5))
    # softmax rows sum to 1
    assert bool(jnp.allclose(jnp.sum(pred_x, axis=-1), 1.0, atol=1e-5))
    assert bool(jnp.allclose(jnp.sum(pred_ix, axis=-1), 1.0, atol=1e-5))
    # sigmoid outputs in [0, 1] (inclusive: f32 sigmoid saturates to exactly
    # 0.0 / 1.0 once a gram logit exceeds ~|17|)
    assert bool(jnp.all((pred_a >= 0.0) & (pred_a <= 1.0)))
    assert bool(jnp.all((pred_ia >= 0.0) & (pred_ia <= 1.0)))

    print("KERNEL_OK")
</pallas_src>

<mosaic_0001>
module attributes {stable_mosaic.version = 11 : i64} {
  func.func @kernel(%arg0: memref<32x32xbf16, #tpu.memory_space<vmem>>, %arg1: memref<32x16xbf16, #tpu.memory_space<vmem>>, %arg2: memref<32x8xf32, #tpu.memory_space<vmem>>, %arg3: memref<296x32xbf16, #tpu.memory_space<vmem>>, %arg4: memref<12x32xf32, #tpu.memory_space<vmem>>, %arg5: memref<32x128xf32, #tpu.memory_space<vmem>>, %arg6: memref<32x32xf32, #tpu.memory_space<vmem>>, %arg7: memref<32x32xf32, #tpu.memory_space<vmem>>) attributes {dimension_semantics = [], scalar_prefetch = 0 : i64, scratch_operands = 0 : i64, tpu.core_type = #tpu.core_type<tc>} {
    %c0 = arith.constant 0 : index
    %c0_0 = arith.constant 0 : index
    %0 = vector.load %arg0[%c0, %c0_0] : memref<32x32xbf16, #tpu.memory_space<vmem>>, vector<32x32xbf16>
    %c0_1 = arith.constant 0 : index
    %c0_2 = arith.constant 0 : index
    %1 = vector.load %arg1[%c0_1, %c0_2] : memref<32x16xbf16, #tpu.memory_space<vmem>>, vector<32x16xbf16>
    %cst = arith.constant dense<0.000000e+00> : vector<32x16xf32>
    %2 = tpu.matmul %0, %1, %cst {dimension_numbers = #tpu.dot_dimension_numbers<[1], [0], [0], [1], [0, 0, 1, 1], [], []>} : vector<32x32xbf16>, vector<32x16xbf16>, vector<32x16xf32> -> vector<32x16xf32>
    %c0_3 = arith.constant 0 : index
    %c0_4 = arith.constant 0 : index
    %3 = vector.load %arg3[%c0_3, %c0_4] : memref<296x32xbf16, #tpu.memory_space<vmem>>, vector<16x32xbf16>
    %4 = arith.truncf %2 : vector<32x16xf32> to vector<32x16xbf16>
    %cst_5 = arith.constant dense<0.000000e+00> : vector<32x32xf32>
    %5 = tpu.matmul %4, %3, %cst_5 {dimension_numbers = #tpu.dot_dimension_numbers<[1], [0], [0], [1], [0, 0, 1, 1], [], []>} : vector<32x16xbf16>, vector<16x32xbf16>, vector<32x32xf32> -> vector<32x32xf32>
    %c0_6 = arith.constant 0 : index
    %c0_7 = arith.constant 0 : index
    %6 = vector.load %arg4[%c0_6, %c0_7] : memref<12x32xf32, #tpu.memory_space<vmem>>, vector<1x32xf32>
    %7 = vector.broadcast %6 : vector<1x32xf32> to vector<32x32xf32>
    %8 = arith.addf %5, %7 : vector<32x32xf32>
    %cst_8 = arith.constant 0.000000e+00 : f32
    %9 = vector.broadcast %cst_8 : f32 to vector<32x32xf32>
    %10 = arith.maximumf %8, %9 : vector<32x32xf32>
    %c16 = arith.constant 16 : index
    %c0_9 = arith.constant 0 : index
    %11 = vector.load %arg3[%c16, %c0_9] : memref<296x32xbf16, #tpu.memory_space<vmem>>, vector<32x32xbf16>
    %12 = arith.truncf %10 : vector<32x32xf32> to vector<32x32xbf16>
    %cst_10 = arith.constant dense<0.000000e+00> : vector<32x32xf32>
    %13 = tpu.matmul %12, %11, %cst_10 {dimension_numbers = #tpu.dot_dimension_numbers<[1], [0], [0], [1], [0, 0, 1, 1], [], []>} : vector<32x32xbf16>, vector<32x32xbf16>, vector<32x32xf32> -> vector<32x32xf32>
    %14 = arith.truncf %13 : vector<32x32xf32> to vector<32x32xbf16>
    %cst_11 = arith.constant dense<0.000000e+00> : vector<32x32xf32>
    %15 = tpu.matmul %0, %14, %cst_11 {dimension_numbers = #tpu.dot_dimension_numbers<[1], [0], [0], [1], [0, 0, 1, 1], [], []>} : vector<32x32xbf16>, vector<32x32xbf16>, vector<32x32xf32> -> vector<32x32xf32>
    %c1 = arith.constant 1 : index
    %c0_12 = arith.constant 0 : index
    %16 = vector.load %arg4[%c1, %c0_12] : memref<12x32xf32, #tpu.memory_space<vmem>>, vector<1x32xf32>
    %17 = vector.broadcast %16 : vector<1x32xf32> to vector<32x32xf32>
    %18 = arith.addf %15, %17 : vector<32x32xf32>
    %cst_13 = arith.constant 0.000000e+00 : f32
    %19 = vector.broadcast %cst_13 : f32 to vector<32x32xf32>
    %20 = arith.maximumf %18, %19 : vector<32x32xf32>
    %21 = arith.addf %20, %10 : vector<32x32xf32>
    %c48 = arith.constant 48 : index
    %c0_14 = arith.constant 0 : index
    %22 = vector.load %arg3[%c48, %c0_14] : memref<296x32xbf16, #tpu.memory_space<vmem>>, vector<32x16xbf16>
    %23 = arith.truncf %21 : vector<32x32xf32> to vector<32x32xbf16>
    %cst_15 = arith.constant dense<0.000000e+00> : vector<32x16xf32>
    %24 = tpu.matmul %23, %22, %cst_15 {dimension_numbers = #tpu.dot_dimension_numbers<[1], [0], [0], [1], [0, 0, 1, 1], [], []>} : vector<32x32xbf16>, vector<32x16xbf16>, vector<32x16xf32> -> vector<32x16xf32>
    %25 = arith.truncf %24 : vector<32x16xf32> to vector<32x16xbf16>
    %cst_16 = arith.constant dense<0.000000e+00> : vector<32x16xf32>
    %26 = tpu.matmul %0, %25, %cst_16 {dimension_numbers = #tpu.dot_dimension_numbers<[1], [0], [0], [1], [0, 0, 1, 1], [], []>} : vector<32x32xbf16>, vector<32x16xbf16>, vector<32x16xf32> -> vector<32x16xf32>
    %c2 = arith.constant 2 : index
    %c0_17 = arith.constant 0 : index
    %27 = vector.load %arg4[%c2, %c0_17] : memref<12x32xf32, #tpu.memory_space<vmem>>, vector<1x16xf32>
    %28 = vector.broadcast %27 : vector<1x16xf32> to vector<32x16xf32>
    %29 = arith.addf %26, %28 : vector<32x16xf32>
    %30 = vector.extract_strided_slice %29 {offsets = [0, 0], sizes = [32, 8], strides = [1, 1]} : vector<32x16xf32> to vector<32x8xf32>
    %31 = vector.extract_strided_slice %29 {offsets = [0, 8], sizes = [32, 8], strides = [1, 1]} : vector<32x16xf32> to vector<32x8xf32>
    %cst_18 = arith.constant 0.000000e+00 : f32
    %32 = vector.broadcast %cst_18 : f32 to vector<32x8xf32>
    %33 = arith.maximumf %31, %32 : vector<32x8xf32>
    %34 = math.absf %31 : vector<32x8xf32>
    %cst_19 = arith.constant 0.000000e+00 : f32
    %35 = vector.broadcast %cst_19 : f32 to vector<32x8xf32>
    %36 = arith.subf %35, %34 : vector<32x8xf32>
    %37 = math.exp %36 : vector<32x8xf32>
    %38 = math.log1p %37 : vector<32x8xf32>
    %39 = arith.addf %33, %38 : vector<32x8xf32>
    %cst_20 = arith.constant 9.99999997E-7 : f32
    %40 = vector.broadcast %cst_20 : f32 to vector<32x8xf32>
    %41 = arith.addf %39, %40 : vector<32x8xf32>
    %c0_21 = arith.constant 0 : index
    %c0_22 = arith.constant 0 : index
    %42 = vector.load %arg2[%c0_21, %c0_22] : memref<32x8xf32, #tpu.memory_space<vmem>>, vector<32x8xf32>
    %43 = arith.mulf %41, %42 : vector<32x8xf32>
    %44 = arith.addf %30, %43 : vector<32x8xf32>
    %c80 = arith.constant 80 : index
    %c0_23 = arith.constant 0 : index
    %45 = vector.load %arg3[%c80, %c0_23] : memref<296x32xbf16, #tpu.memory_space<vmem>>, vector<8x32xbf16>
    %c3 = arith.constant 3 : index
    %c0_24 = arith.constant 0 : index
    %46 = vector.load %arg4[%c3, %c0_24] : memref<12x32xf32, #tpu.memory_space<vmem>>, vector<1x32xf32>
    %c88 = arith.constant 88 : index
    %c0_25 = arith.constant 0 : index
    %47 = vector.load %arg3[%c88, %c0_25] : memref<296x32xbf16, #tpu.memory_space<vmem>>, vector<32x32xbf16>
    %c4 = arith.constant 4 : index
    %c0_26 = arith.constant 0 : index
    %48 = vector.load %arg4[%c4, %c0_26] : memref<12x32xf32, #tpu.memory_space<vmem>>, vector<1x32xf32>
    %c120 = arith.constant 120 : index
    %c0_27 = arith.constant 0 : index
    %49 = vector.load %arg3[%c120, %c0_27] : memref<296x32xbf16, #tpu.memory_space<vmem>>, vector<32x4xbf16>
    %c5 = arith.constant 5 : index
    %c0_28 = arith.constant 0 : index
    %50 = vector.load %arg4[%c5, %c0_28] : memref<12x32xf32, #tpu.memory_space<vmem>>, vector<1x4xf32>
    %51 = arith.truncf %44 : vector<32x8xf32> to vector<32x8xbf16>
    %cst_29 = arith.constant dense<0.000000e+00> : vector<32x32xf32>
    %52 = tpu.matmul %51, %45, %cst_29 {dimension_numbers = #tpu.dot_dimension_numbers<[1], [0], [0], [1], [0, 0, 1, 1], [], []>} : vector<32x8xbf16>, vector<8x32xbf16>, vector<32x32xf32> -> vector<32x32xf32>
    %53 = vector.broadcast %46 : vector<1x32xf32> to vector<32x32xf32>
    %54 = arith.addf %52, %53 : vector<32x32xf32>
    %cst_30 = arith.constant 0.000000e+00 : f32
    %55 = vector.broadcast %cst_30 : f32 to vector<32x32xf32>
    %56 = arith.maximumf %54, %55 : vector<32x32xf32>
    %57 = arith.truncf %56 : vector<32x32xf32> to vector<32x32xbf16>
    %cst_31 = arith.constant dense<0.000000e+00> : vector<32x32xf32>
    %58 = tpu.matmul %57, %47, %cst_31 {dimension_numbers = #tpu.dot_dimension_numbers<[1], [0], [0], [1], [0, 0, 1, 1], [], []>} : vector<32x32xbf16>, vector<32x32xbf16>, vector<32x32xf32> -> vector<32x32xf32>
    %59 = vector.broadcast %48 : vector<1x32xf32> to vector<32x32xf32>
    %60 = arith.addf %58, %59 : vector<32x32xf32>
    %cst_32 = arith.constant 0.000000e+00 : f32
    %61 = vector.broadcast %cst_32 : f32 to vector<32x32xf32>
    %62 = arith.maximumf %60, %61 : vector<32x32xf32>
    %63 = arith.truncf %62 : vector<32x32xf32> to vector<32x32xbf16>
    %cst_33 = arith.constant dense<0.000000e+00> : vector<32x4xf32>
    %64 = tpu.matmul %63, %49, %cst_33 {dimension_numbers = #tpu.dot_dimension_numbers<[1], [0], [0], [1], [0, 0, 1, 1], [], []>} : vector<32x32xbf16>, vector<32x4xbf16>, vector<32x4xf32> -> vector<32x4xf32>
    %65 = vector.broadcast %50 : vector<1x4xf32> to vector<32x4xf32>
    %66 = arith.addf %64, %65 : vector<32x4xf32>
    %c224 = arith.constant 224 : index
    %c0_34 = arith.constant 0 : index
    %67 = vector.load %arg3[%c224, %c0_34] : memref<296x32xbf16, #tpu.memory_space<vmem>>, vector<4x32xbf16>
    %c9 = arith.constant 9 : index
    %c0_35 = arith.constant 0 : index
    %68 = vector.load %arg4[%c9, %c0_35] : memref<12x32xf32, #tpu.memory_space<vmem>>, vector<1x32xf32>
    %c232 = arith.constant 232 : index
    %c0_36 = arith.constant 0 : index
    %69 = vector.load %arg3[%c232, %c0_36] : memref<296x32xbf16, #tpu.memory_space<vmem>>, vector<32x32xbf16>
    %c10 = arith.constant 10 : index
    %c0_37 = arith.constant 0 : index
    %70 = vector.load %arg4[%c10, %c0_37] : memref<12x32xf32, #tpu.memory_space<vmem>>, vector<1x32xf32>
    %c264 = arith.constant 264 : index
    %c0_38 = arith.constant 0 : index
    %71 = vector.load %arg3[%c264, %c0_38] : memref<296x32xbf16, #tpu.memory_space<vmem>>, vector<32x8xbf16>
    %c11 = arith.constant 11 : index
    %c0_39 = arith.constant 0 : index
    %72 = vector.load %arg4[%c11, %c0_39] : memref<12x32xf32, #tpu.memory_space<vmem>>, vector<1x8xf32>
    %73 = arith.truncf %66 : vector<32x4xf32> to vector<32x4xbf16>
    %cst_40 = arith.constant dense<0.000000e+00> : vector<32x32xf32>
    %74 = tpu.matmul %73, %67, %cst_40 {dimension_numbers = #tpu.dot_dimension_numbers<[1], [0], [0], [1], [0, 0, 1, 1], [], []>} : vector<32x4xbf16>, vector<4x32xbf16>, vector<32x32xf32> -> vector<32x32xf32>
    %75 = vector.broadcast %68 : vector<1x32xf32> to vector<32x32xf32>
    %76 = arith.addf %74, %75 : vector<32x32xf32>
    %cst_41 = arith.constant 0.000000e+00 : f32
    %77 = vector.broadcast %cst_41 : f32 to vector<32x32xf32>
    %78 = arith.maximumf %76, %77 : vector<32x32xf32>
    %79 = arith.truncf %78 : vector<32x32xf32> to vector<32x32xbf16>
    %cst_42 = arith.constant dense<0.000000e+00> : vector<32x32xf32>
    %80 = tpu.matmul %79, %69, %cst_42 {dimension_numbers = #tpu.dot_dimension_numbers<[1], [0], [0], [1], [0, 0, 1, 1], [], []>} : vector<32x32xbf16>, vector<32x32xbf16>, vector<32x32xf32> -> vector<32x32xf32>
    %81 = vector.broadcast %70 : vector<1x32xf32> to vector<32x32xf32>
    %82 = arith.addf %80, %81 : vector<32x32xf32>
    %cst_43 = arith.constant 0.000000e+00 : f32
    %83 = vector.broadcast %cst_43 : f32 to vector<32x32xf32>
    %84 = arith.maximumf %82, %83 : vector<32x32xf32>
    %85 = arith.truncf %84 : vector<32x32xf32> to vector<32x32xbf16>
    %cst_44 = arith.constant dense<0.000000e+00> : vector<32x8xf32>
    %86 = tpu.matmul %85, %71, %cst_44 {dimension_numbers = #tpu.dot_dimension_numbers<[1], [0], [0], [1], [0, 0, 1, 1], [], []>} : vector<32x32xbf16>, vector<32x8xbf16>, vector<32x8xf32> -> vector<32x8xf32>
    %87 = vector.broadcast %72 : vector<1x8xf32> to vector<32x8xf32>
    %88 = arith.addf %86, %87 : vector<32x8xf32>
    %cst_45 = arith.constant dense<0xFF800000> : vector<32xf32>
    %89 = vector.multi_reduction <maximumf>, %88, %cst_45 [1] : vector<32x8xf32> to vector<32xf32>
    %90 = vector.shape_cast %89 : vector<32xf32> to vector<32x1xf32>
    %91 = vector.broadcast %90 : vector<32x1xf32> to vector<32x8xf32>
    %92 = arith.subf %88, %91 : vector<32x8xf32>
    %93 = math.exp %92 : vector<32x8xf32>
    %cst_46 = arith.constant dense<0.000000e+00> : vector<32xf32>
    %94 = vector.multi_reduction <add>, %93, %cst_46 [1] : vector<32x8xf32> to vector<32xf32>
    %95 = vector.shape_cast %94 : vector<32xf32> to vector<32x1xf32>
    %96 = tpu.reciprocal %95 : vector<32x1xf32> -> vector<32x1xf32>
    %97 = vector.broadcast %96 : vector<32x1xf32> to vector<32x8xf32>
    %98 = arith.mulf %93, %97 : vector<32x8xf32>
    %99 = tpu.concatenate %44, %98 in 0 : vector<32x8xf32>, vector<32x8xf32> -> vector<64x8xf32>
    %c152 = arith.constant 152 : index
    %c0_47 = arith.constant 0 : index
    %100 = vector.load %arg3[%c152, %c0_47] : memref<296x32xbf16, #tpu.memory_space<vmem>>, vector<8x32xbf16>
    %c6 = arith.constant 6 : index
    %c0_48 = arith.constant 0 : index
    %101 = vector.load %arg4[%c6, %c0_48] : memref<12x32xf32, #tpu.memory_space<vmem>>, vector<1x32xf32>
    %c160 = arith.constant 160 : index
    %c0_49 = arith.constant 0 : index
    %102 = vector.load %arg3[%c160, %c0_49] : memref<296x32xbf16, #tpu.memory_space<vmem>>, vector<32x32xbf16>
    %c7 = arith.constant 7 : index
    %c0_50 = arith.constant 0 : index
    %103 = vector.load %arg4[%c7, %c0_50] : memref<12x32xf32, #tpu.memory_space<vmem>>, vector<1x32xf32>
    %c192 = arith.constant 192 : index
    %c0_51 = arith.constant 0 : index
    %104 = vector.load %arg3[%c192, %c0_51] : memref<296x32xbf16, #tpu.memory_space<vmem>>, vector<32x16xbf16>
    %c8 = arith.constant 8 : index
    %c0_52 = arith.constant 0 : index
    %105 = vector.load %arg4[%c8, %c0_52] : memref<12x32xf32, #tpu.memory_space<vmem>>, vector<1x16xf32>
    %106 = arith.truncf %99 : vector<64x8xf32> to vector<64x8xbf16>
    %cst_53 = arith.constant dense<0.000000e+00> : vector<64x32xf32>
    %107 = tpu.matmul %106, %100, %cst_53 {dimension_numbers = #tpu.dot_dimension_numbers<[1], [0], [0], [1], [0, 0, 1, 1], [], []>} : vector<64x8xbf16>, vector<8x32xbf16>, vector<64x32xf32> -> vector<64x32xf32>
    %108 = vector.broadcast %101 : vector<1x32xf32> to vector<64x32xf32>
    %109 = arith.addf %107, %108 : vector<64x32xf32>
    %cst_54 = arith.constant 0.000000e+00 : f32
    %110 = vector.broadcast %cst_54 : f32 to vector<64x32xf32>
    %111 = arith.maximumf %109, %110 : vector<64x32xf32>
    %112 = arith.truncf %111 : vector<64x32xf32> to vector<64x32xbf16>
    %cst_55 = arith.constant dense<0.000000e+00> : vector<64x32xf32>
    %113 = tpu.matmul %112, %102, %cst_55 {dimension_numbers = #tpu.dot_dimension_numbers<[1], [0], [0], [1], [0, 0, 1, 1], [], []>} : vector<64x32xbf16>, vector<32x32xbf16>, vector<64x32xf32> -> vector<64x32xf32>
    %114 = vector.broadcast %103 : vector<1x32xf32> to vector<64x32xf32>
    %115 = arith.addf %113, %114 : vector<64x32xf32>
    %cst_56 = arith.constant 0.000000e+00 : f32
    %116 = vector.broadcast %cst_56 : f32 to vector<64x32xf32>
    %117 = arith.maximumf %115, %116 : vector<64x32xf32>
    %118 = arith.truncf %117 : vector<64x32xf32> to vector<64x32xbf16>
    %cst_57 = arith.constant dense<0.000000e+00> : vector<64x16xf32>
    %119 = tpu.matmul %118, %104, %cst_57 {dimension_numbers = #tpu.dot_dimension_numbers<[1], [0], [0], [1], [0, 0, 1, 1], [], []>} : vector<64x32xbf16>, vector<32x16xbf16>, vector<64x16xf32> -> vector<64x16xf32>
    %120 = vector.broadcast %105 : vector<1x16xf32> to vector<64x16xf32>
    %121 = arith.addf %119, %120 : vector<64x16xf32>
    %cst_58 = arith.constant dense<0xFF800000> : vector<64xf32>
    %122 = vector.multi_reduction <maximumf>, %121, %cst_58 [1] : vector<64x16xf32> to vector<64xf32>
    %123 = vector.shape_cast %122 : vector<64xf32> to vector<64x1xf32>
    %124 = vector.broadcast %123 : vector<64x1xf32> to vector<64x16xf32>
    %125 = arith.subf %121, %124 : vector<64x16xf32>
    %126 = math.exp %125 : vector<64x16xf32>
    %cst_59 = arith.constant dense<0.000000e+00> : vector<64xf32>
    %127 = vector.multi_reduction <add>, %126, %cst_59 [1] : vector<64x16xf32> to vector<64xf32>
    %128 = vector.shape_cast %127 : vector<64xf32> to vector<64x1xf32>
    %129 = tpu.reciprocal %128 : vector<64x1xf32> -> vector<64x1xf32>
    %130 = vector.broadcast %129 : vector<64x1xf32> to vector<64x16xf32>
    %131 = arith.mulf %126, %130 : vector<64x16xf32>
    %132 = vector.extract_strided_slice %131 {offsets = [0, 0], sizes = [32, 16], strides = [1, 1]} : vector<64x16xf32> to vector<32x16xf32>
    %133 = vector.extract_strided_slice %131 {offsets = [32, 0], sizes = [32, 16], strides = [1, 1]} : vector<64x16xf32> to vector<32x16xf32>
    %cst_60 = arith.constant 0.000000e+00 : f32
    %134 = vector.broadcast %cst_60 : f32 to vector<32x68xf32>
    %135 = tpu.concatenate %29, %44, %66, %132, %133, %134 in 1 : vector<32x16xf32>, vector<32x8xf32>, vector<32x4xf32>, vector<32x16xf32>, vector<32x16xf32>, vector<32x68xf32> -> vector<32x128xf32>
    %c0_61 = arith.constant 0 : index
    %c0_62 = arith.constant 0 : index
    %136 = vector.load %arg5[%c0_61, %c0_62] : memref<32x128xf32, #tpu.memory_space<vmem>>, vector<32x128xf32>
    tpu.vector_store %arg5[%c0_61, %c0_62], %135 {strides = array<i32>} : memref<32x128xf32, #tpu.memory_space<vmem>>, vector<32x128xf32>,
    %137 = arith.truncf %44 : vector<32x8xf32> to vector<32x8xbf16>
    %cst_63 = arith.constant dense<0.000000e+00> : vector<32x32xf32>
    %138 = tpu.matmul %137, %137, %cst_63 {dimension_numbers = #tpu.dot_dimension_numbers<[1], [1], [0], [0], [0, 0, 1, 0], [], []>} : vector<32x8xbf16>, vector<32x8xbf16>, vector<32x32xf32> -> vector<32x32xf32>
    %cst_64 = arith.constant 5.000000e-01 : f32
    %139 = vector.broadcast %cst_64 : f32 to vector<32x32xf32>
    %140 = arith.mulf %139, %138 : vector<32x32xf32>
    %141 = math.tanh %140 : vector<32x32xf32>
    %cst_65 = arith.constant 5.000000e-01 : f32
    %142 = vector.broadcast %cst_65 : f32 to vector<32x32xf32>
    %143 = arith.mulf %142, %141 : vector<32x32xf32>
    %cst_66 = arith.constant 5.000000e-01 : f32
    %144 = vector.broadcast %cst_66 : f32 to vector<32x32xf32>
    %145 = arith.addf %143, %144 : vector<32x32xf32>
    %c0_67 = arith.constant 0 : index
    %c0_68 = arith.constant 0 : index
    %146 = vector.load %arg6[%c0_67, %c0_68] : memref<32x32xf32, #tpu.memory_space<vmem>>, vector<32x32xf32>
    tpu.vector_store %arg6[%c0_67, %c0_68], %145 {strides = array<i32>} : memref<32x32xf32, #tpu.memory_space<vmem>>, vector<32x32xf32>,
    %147 = arith.truncf %98 : vector<32x8xf32> to vector<32x8xbf16>
    %cst_69 = arith.constant dense<0.000000e+00> : vector<32x32xf32>
    %148 = tpu.matmul %147, %147, %cst_69 {dimension_numbers = #tpu.dot_dimension_numbers<[1], [1], [0], [0], [0, 0, 1, 0], [], []>} : vector<32x8xbf16>, vector<32x8xbf16>, vector<32x32xf32> -> vector<32x32xf32>
    %cst_70 = arith.constant 5.000000e-01 : f32
    %149 = vector.broadcast %cst_70 : f32 to vector<32x32xf32>
    %150 = arith.mulf %149, %148 : vector<32x32xf32>
    %151 = math.tanh %150 : vector<32x32xf32>
    %cst_71 = arith.constant 5.000000e-01 : f32
    %152 = vector.broadcast %cst_71 : f32 to vector<32x32xf32>
    %153 = arith.mulf %152, %151 : vector<32x32xf32>
    %cst_72 = arith.constant 5.000000e-01 : f32
    %154 = vector.broadcast %cst_72 : f32 to vector<32x32xf32>
    %155 = arith.addf %153, %154 : vector<32x32xf32>
    %c0_73 = arith.constant 0 : index
    %c0_74 = arith.constant 0 : index
    %156 = vector.load %arg7[%c0_73, %c0_74] : memref<32x32xf32, #tpu.memory_space<vmem>>, vector<32x32xf32>
    tpu.vector_store %arg7[%c0_73, %c0_74], %155 {strides = array<i32>} : memref<32x32xf32, #tpu.memory_space<vmem>>, vector<32x32xf32>,
    return
  }
}

</mosaic_0001>

<bundles_post_ra>
// kernel: igraph_vae_forward.1
= control target key start
LH: loop header
LB: loop body
LE: loop exit
PB: predicated region body
PF: predicated region fallthrough
CT: control target
= control target key end

     0   :  { %13 = vsyncpa [#allocation3], 0  ;;  %s2139_s0 = inlined_call_operand.vmem [shape: bf16[32,32], index: 0, kind: input, shape index: {}]   ;;  %s2140_s1 = inlined_call_operand.vmem [shape: bf16[32,16], index: 1, kind: input, shape index: {}]   ;;  %s2141_s2 = inlined_call_operand.vmem [shape: f32[32,8], index: 2, kind: input, shape index: {}]   ;;  %s2142_s3 = inlined_call_operand.vmem [shape: bf16[296,32], index: 3, kind: input, shape index: {}]   ;;  %s2143_s4 = inlined_call_operand.vmem [shape: f32[12,32], index: 4, kind: input, shape index: {}]   ;;  %s2144_s5 = inlined_call_operand.vmem [shape: f32[32,128], index: 5, kind: output, shape index: {0}]   ;;  %s2145_s6 = inlined_call_operand.hbm [shape: f32[32,32], index: 6, kind: output, shape index: {1}]   ;;  %s2146_s7 = inlined_call_operand.hbm [shape: f32[32,32], index: 7, kind: output, shape index: {2}]  }
   0x1   :  { %v1448_v0 = vld [vmem:[%s2140_s1 + $0x8] sm:$0xff]  ;;  %v1447_v1 = vld [vmem:[%s2140_s1] sm:$0xff] }
   0x2   :  { %69 = vmatpush.bf16.msra.mxu0 %v1448_v0  ;;  %v1677_v2 = vld [vmem:[%s2139_s0] sm:$0xff] }
   0x3   :  { %14 = vsyncpa [#allocation5], 0  ;;  %vm56_vm0 = vcmask 261120   ;;  %v1684_v3 = vld [vmem:[%s2139_s0 + $0x8] sm:$0xff]  ;;  %v1449_v4 = vld [vmem:[%s2142_s3] sm:$0xff]  ;;  %vm94_vm1 = vcmask 130048  }
   0x4   :  { %108 = vmatpush.bf16.msra.mxu1 %v1449_v4  ;;  %v1451_v11 = vld [vmem:[%s2142_s3 + $0x10] sm:$0xff]  ;;  %v1450_v12 = vld [vmem:[%s2142_s3 + $0x8] sm:$0xff]  ;;  %v1475_v14 = vld [vmem:[%s2143_s4] ss:$0 sm:$0xff]  ;;  %s1619_s25 = smov 8   ;;  %vm394_vm6 = vcmask 1043456  }
   0x5   :  { %154 = vmatpush.bf16.msra.mxu2 %v1451_v11  ;;  %v1453_v34 = vld [vmem:[%s2142_s3 + $0x20] sm:$0xff]  ;;  %v1452_v35 = vld [vmem:[%s2142_s3 + $0x18] sm:$0xff]  ;;  %v330_v59 = vld [vmem:[%s2141_s2 + $0x10] sm:$0xff]  ;;  %vm387_vm7 = vcmask 64512   ;;  %vm527_vm8 = vcmask 1041408   ;;  %vm520_vm9 = vcmask 31744  }
   0x6   :  { %70 = vmatpush.bf16.msra.mxu0 %v1447_v1  ;;  %v1476_v37 = vld [vmem:[%s2143_s4 + $0x1] ss:$0 sm:$0xff]  ;;  %340 = vrot.lane.b32.xlu1 %v330_v59, %s1619_s25  ;;  %v329_v61 = vld [vmem:[%s2141_s2 + $0x8] sm:$0xff]  ;;  %v331_v63 = vld [vmem:[%s2141_s2 + $0x18] sm:$0xff]  ;;  %s1622_s30 = smov 24   ;;  %s1623_s8 = smov 28  }
   0x7   :  { %v328_v58 = vld [vmem:[%s2141_s2] sm:$0xff]  ;;  %s1620_s2 = smov 120   ;;  %s1625_s1 = smov [#allocation2]  }
   0x8   :  { %228 = vmatpush.bf16.msrb.mxu1 %v1453_v34  ;;  %336 = vrot.lane.b32.xlu0 %v328_v58, %s1619_s25  ;;  %v1477_v1 = vld [vmem:[%s2143_s4 + $0x2] ss:$0 sm:$0xff]  ;;  %s1287_s9 = sshll.u32 %s1625_s1, 4  ;;  %s1289_s11 = sshll.u32 %s2145_s6, 4  ;;  %s1288_s9 = int_to_ptr.vmem [resolvable:$true] %s1287_s9  ;;  %s1290_s11 = int_to_ptr.hbm [resolvable:$true] %s1289_s11 }
   0x9   :  { %1337 = vmatmul.msk.bf16.vlgmr.msra.gmra.mxu0 %vm56_vm0, %v1677_v2  ;;  %155 = vmatpush.bf16.msra.mxu2 %v1450_v12  ;;  %s1626_s12 = smov [#allocation4]   ;;  %s1627_s14 = smov 128  }
   0xa   :  { %s1300_s13 = sshll.u32 %s1626_s12, 4  ;;  %s1302_s16 = sshll.u32 %s2146_s7, 4  ;;  %s1301_s13 = int_to_ptr.vmem [resolvable:$true] %s1300_s13  ;;  %s1303_s16 = int_to_ptr.hbm [resolvable:$true] %s1302_s16 }
   0xc   :  { %229 = vmatpush.bf16.msrb.mxu1 %v1452_v35 }
   0xe   :  { %342 = vrot.lane.b32.xlu1 %v331_v63, %s1619_s25 }
  0x10   :  { %338 = vrot.lane.b32.xlu0 %v329_v61, %s1619_s25 }
  0x19   :  { %1338 = vmatmul.msk.bf16.gmra.mxu0 %vm56_vm0, %v1684_v3 }
  0x86   :  { %v72_v5 = vpop.f32.mrf.mxu0 }
  0x8e   :  { %v74_v6 = vpop.f32.mrf.mxu0 }
  0x8f   :  { %v84_v7 = vpack.c.bf16 %v74_v6, %v72_v5 }
  0x91   :  { %1343 = vmatmul.msk.bf16.vlgmr.msra.gmra.mxu1 %vm94_vm1, %v84_v7 }
  0x96   :  { %v77_v8 = vpop.f32.mrf.mxu0 }
  0x9e   :  { %v79_v9 = vpop.f32.mrf.mxu0 }
  0x9f   :  { %v85_v10 = vpack.c.bf16 %v79_v9, %v77_v8 }
  0xa1   :  { %1344 = vmatmul.msk.bf16.gmra.mxu1 %vm94_vm1, %v85_v10 }
 0x10e   :  { %v110_v13 = vpop.f32.mrf.mxu1 }
 0x10f   :  { %v111_v15 = vadd.f32 %v1475_v14, %v110_v13 }
 0x111   :  { %v120_v18 = vmax.f32 %v111_v15, 0.0 }
 0x116   :  { %v112_v16 = vpop.f32.mrf.mxu1 }
 0x117   :  { %v113_v17 = vadd.f32 %v1475_v14, %v112_v16 }
 0x119   :  { %v121_v19 = vmax.f32 %v113_v17, 0.0 }
 0x11b   :  { %v128_v20 = vpack.c.bf16 %v121_v19, %v120_v18 }
 0x11d   :  { %1353 = vmatmul.msk.bf16.vlgmr.msra.gmra.mxu2 %vm56_vm0, %v128_v20 }
 0x11e   :  { %v115_v21 = vpop.f32.mrf.mxu1 }
 0x11f   :  { %v116_v22 = vadd.f32 %v1475_v14, %v115_v21 }
 0x121   :  { %v122_v25 = vmax.f32 %v116_v22, 0.0 }
 0x126   :  { %v117_v23 = vpop.f32.mrf.mxu1 }
 0x127   :  { %v118_v24 = vadd.f32 %v1475_v14, %v117_v23 }
 0x129   :  { %v123_v26 = vmax.f32 %v118_v24, 0.0 }
 0x12b   :  { %v129_v27 = vpack.c.bf16 %v123_v26, %v122_v25 }
 0x12d   :  { %1354 = vmatmul.msk.bf16.gmra.mxu2 %vm56_vm0, %v129_v27 }
 0x1a0   :  { %v157_v28 = vpop.f32.mrf.mxu2 }
 0x1a8   :  { %v159_v29 = vpop.f32.mrf.mxu2 }
 0x1a9   :  { %v167_v33 = vpack.c.bf16 %v159_v29, %v157_v28 }
 0x1b0   :  { %v162_v30 = vpop.f32.mrf.mxu2 }
 0x1b8   :  { %v164_v31 = vpop.f32.mrf.mxu2 }
 0x1b9   :  { %v168_v32 = vpack.c.bf16 %v164_v31, %v162_v30 }
 0x1bb   :  { %177 = vmatpush.bf16.msra.mxu3 %v168_v32  ;;  %v337_v32 = vpop.permute.xlu0 %336 }
 0x1bf   :  { %178 = vmatpush.bf16.msra.mxu3 %v167_v33 }
 0x1c2   :  { %1355 = vmatmul.msk.bf16.vlgmr.msra.gmra.mxu3 %vm56_vm0, %v1677_v2 }
 0x1d2   :  { %1356 = vmatmul.msk.bf16.gmra.mxu3 %vm56_vm0, %v1684_v3 }
 0x245   :  { %v180_v36 = vpop.f32.mrf.mxu3 }
 0x246   :  { %v181_v38 = vadd.f32 %v1476_v37, %v180_v36 }
 0x248   :  { %v190_v40 = vmax.f32 %v181_v38, 0.0 }
 0x24a   :  { %v194_v43 = vadd.f32 %v190_v40, %v120_v18 }
 0x24d   :  { %v182_v39 = vpop.f32.mrf.mxu3 }
 0x24e   :  { %v183_v41 = vadd.f32 %v1476_v37, %v182_v39 }
 0x250   :  { %v191_v42 = vmax.f32 %v183_v41, 0.0 }
 0x252   :  { %v195_v44 = vadd.f32 %v191_v42, %v121_v19 }
 0x254   :  { %v202_v45 = vpack.c.bf16 %v195_v44, %v194_v43 }
 0x255   :  { %v185_v46 = vpop.f32.mrf.mxu3 }
 0x256   :  { %1365 = vmatmul.msk.bf16.vlgmr.msrb.gmra.mxu1 %vm56_vm0, %v202_v45  ;;  %v186_v47 = vadd.f32 %v1476_v37, %v185_v46 }
 0x258   :  { %v192_v49 = vmax.f32 %v186_v47, 0.0 }
 0x25a   :  { %v196_v52 = vadd.f32 %v192_v49, %v122_v25 }
 0x25d   :  { %v187_v48 = vpop.f32.mrf.mxu3 }
 0x25e   :  { %v188_v50 = vadd.f32 %v1476_v37, %v187_v48 }
 0x260   :  { %v193_v51 = vmax.f32 %v188_v50, 0.0  ;;  %v339_v50 = vpop.permute.xlu0 %338 }
 0x262   :  { %v197_v53 = vadd.f32 %v193_v51, %v123_v26 }
 0x264   :  { %v203_v54 = vpack.c.bf16 %v197_v53, %v196_v52 }
 0x266   :  { %1366 = vmatmul.msk.bf16.gmra.mxu1 %vm56_vm0, %v203_v54 }
 0x2d3   :  { %v231_v55 = vpop.f32.mrf.mxu1 }
 0x2db   :  { %v233_v56 = vpop.f32.mrf.mxu1 }
 0x2dc   :  { %v241_v0 = vpack.c.bf16 %v233_v56, %v231_v55 }
 0x2e3   :  { %v236_v57 = vpop.f32.mrf.mxu1 }
 0x2eb   :  { %v238_v60 = vpop.f32.mrf.mxu1 }
 0x2ec   :  { %v242_v62 = vpack.c.bf16 %v238_v60, %v236_v57 }
 0x2ee   :  { %251 = vmatpush.bf16.msrb.mxu0 %v242_v62  ;;  %v341_v62 = vpop.permute.xlu1 %340 }
 0x2f2   :  { %252 = vmatpush.bf16.msrb.mxu0 %v241_v0 }
 0x2f5   :  { %1367 = vmatmul.msk.bf16.vlgmr.msrb.gmra.mxu0 %vm56_vm0, %v1677_v2 }
 0x305   :  { %1368 = vmatmul.msk.bf16.gmra.mxu0 %vm56_vm0, %v1684_v3 }
 0x372   :  { %v254_v4 = vpop.f32.mrf.mxu0 }
 0x373   :  { %v1742_v5 = vadd.f32 %v1477_v1, %v254_v4 }
 0x375   :  { %v268_v6 = vand.u32 2147483647, %v1742_v5  ;;  %v264_v30 = vmax.f32 %v1742_v5, 0.0 }
 0x377   :  { %v272_v7 = vsub.f32 0.0, %v268_v6 }
 0x379   :  { %v276_v8 = vmul.f32 1.442695, %v272_v7 }
 0x37a   :  { %v256_v9 = vpop.f32.mrf.mxu0 }
 0x37b   :  { %1487 = vpow2.f32 %v276_v8  ;;  %v1745_v10 = vadd.f32 %v1477_v1, %v256_v9 }
 0x37d   :  { %v269_v2 = vand.u32 2147483647, %v1745_v10  ;;  %v265_v47 = vmax.f32 %v1745_v10, 0.0 }
 0x37f   :  { %v273_v11 = vsub.f32 0.0, %v269_v2 }
 0x381   :  { %v1488_v12 = vpop.eup %1487  ;;  %v278_v3 = vmul.f32 1.442695, %v273_v11 }
 0x382   :  { %v259_v13 = vpop.f32.mrf.mxu0  ;;  %v284_v14 = vadd.f32 1.0, %v1488_v12  ;;  %v287_v15 = vmul.f32 -0.5, %v1488_v12  ;;  %v290_v20 = vand.u32 2147483647, %v1488_v12 }
 0x383   :  { %1489 = vpow2.f32 %v278_v3  ;;  %v1748_v16 = vadd.f32 %v1477_v1, %v259_v13  ;;  %v343_v13 = vpop.permute.xlu1 %342 }
 0x384   :  { %1491 = vlog2.f32 %v284_v14  ;;  %v288_v18 = vadd.f32 1.0, %v287_v15  ;;  %vm291_vm2 = vcmp.lt.f32.partialorder %v290_v20, 0.0004427343 }
 0x385   :  { %v270_v17 = vand.u32 2147483647, %v1748_v16  ;;  %v266_v61 = vmax.f32 %v1748_v16, 0.0 }
 0x386   :  { %v289_v25 = vmul.f32 %v1488_v12, %v288_v18 }
 0x387   :  { %v274_v19 = vsub.f32 0.0, %v270_v17  ;;  %v372_v17 = vld [vmem:[%s2142_s3 + $0x28] sm:$0xf] }
 0x388   :  { %v396_v18 = vsel %vm394_vm6, %v372_v17, 0  ;;  %v1463_v17 = vld [vmem:[%s2142_s3 + $0x58] sm:$0xff] }
 0x389   :  { %v1490_v21 = vpop.eup %1489  ;;  %v280_v22 = vmul.f32 1.442695, %v274_v19  ;;  %405 = vmatpush.bf16.msrb.mxu2 %v396_v18  ;;  %v1462_v18 = vld [vmem:[%s2142_s3 + $0x50] sm:$0xff] }
 0x38a   :  { %v1492_v23 = vpop.eup %1491  ;;  %v261_v24 = vpop.f32.mrf.mxu0  ;;  %v293_v26 = vadd.f32 1.0, %v1490_v21  ;;  %v296_v29 = vmul.f32 -0.5, %v1490_v21  ;;  %v299_v38 = vand.u32 2147483647, %v1490_v21 }
 0x38b   :  { %1493 = vpow2.f32 %v280_v22  ;;  %v1751_v27 = vadd.f32 %v1477_v1, %v261_v24  ;;  %v286_v28 = vmul.f32 0.6931472, %v1492_v23 }
 0x38c   :  { %1495 = vlog2.f32 %v293_v26  ;;  %v297_v36 = vadd.f32 1.0, %v296_v29  ;;  %vm300_vm3 = vcmp.lt.f32.partialorder %v299_v38, 0.0004427343 }
 0x38d   :  { %v271_v31 = vand.u32 2147483647, %v1751_v27  ;;  %v292_v33 = vsel %vm291_vm2, %v289_v25, %v286_v28  ;;  %v267_v11 = vmax.f32 %v1751_v27, 0.0 }
 0x38e   :  { %v320_v34 = vadd.f32 %v292_v33, %v264_v30  ;;  %v298_v45 = vmul.f32 %v1490_v21, %v297_v36  ;;  %v1455_v30 = vld [vmem:[%s2142_s3 + $0x34] sm:$0xff]  ;;  %v1460_v33 = vld [vmem:[%s2142_s3 + $0x84] sm:$0xff] }
 0x38f   :  { %v275_v35 = vsub.f32 0.0, %v271_v31  ;;  %448 = vmatpush.bf16.msrb.mxu3 %v1455_v30  ;;  %v1454_v31 = vld [vmem:[%s2142_s3 + $0x2c] sm:$0xff] }
 0x390   :  { %v324_v37 = vadd.f32 1e-06, %v320_v34 }
 0x391   :  { %v1494_v39 = vpop.eup %1493  ;;  %v282_v40 = vmul.f32 1.442695, %v275_v35  ;;  %v1478_v35 = vld [vmem:[%s2143_s4 + $0x3] ss:$0 sm:$0xff] }
 0x392   :  { %v1496_v41 = vpop.eup %1495  ;;  %v348_v42 = vmul.f32 %v337_v32, %v324_v37  ;;  %v302_v43 = vadd.f32 1.0, %v1494_v39  ;;  %v305_v46 = vmul.f32 -0.5, %v1494_v39  ;;  %v308_v53 = vand.u32 2147483647, %v1494_v39  ;;  %v1461_v32 = vld [vmem:[%s2142_s3 + $0x8c] sm:$0xff] }
 0x393   :  { %1497 = vpow2.f32 %v282_v40  ;;  %v295_v44 = vmul.f32 0.6931472, %v1496_v41  ;;  %449 = vmatpush.bf16.msrb.mxu3 %v1454_v31 }
 0x394   :  { %356 = vrot.lane.b32.xlu2 %v348_v42, %s1620_s2  ;;  %1499 = vlog2.f32 %v302_v43  ;;  %v306_v51 = vadd.f32 1.0, %v305_v46  ;;  %vm309_vm4 = vcmp.lt.f32.partialorder %v308_v53, 0.0004427343 }
 0x395   :  { %v301_v48 = vsel %vm300_vm3, %v298_v45, %v295_v44 }
 0x396   :  { %v321_v49 = vadd.f32 %v301_v48, %v265_v47  ;;  %v307_v59 = vmul.f32 %v1494_v39, %v306_v51  ;;  %v1457_v51 = vld [vmem:[%s2142_s3 + $0x44] sm:$0xff] }
 0x397   :  { %625 = vmatpush.bf16.msra.mxu3 %v1461_v32  ;;  %492 = vmatpush.bf16.msra.mxu1 %v1457_v51  ;;  %v1857_v32 = vld [vmem:[%s2143_s4 + $0x6] ss:$0 sm:$0xff] }
 0x398   :  { %v325_v52 = vadd.f32 1e-06, %v321_v49 }
 0x399   :  { %v1498_v54 = vpop.eup %1497 }
 0x39a   :  { %v1500_v55 = vpop.eup %1499  ;;  %v349_v56 = vmul.f32 %v339_v50, %v325_v52  ;;  %v311_v57 = vadd.f32 1.0, %v1498_v54  ;;  %v314_v60 = vmul.f32 -0.5, %v1498_v54  ;;  %v317_v6 = vand.u32 2147483647, %v1498_v54  ;;  %v734_v52 = vld [vmem:[%s2142_s3 + $0x4c] sm:$0xf] }
 0x39b   :  { %v304_v58 = vmul.f32 0.6931472, %v1500_v55  ;;  %626 = vmatpush.bf16.msra.mxu3 %v1460_v33  ;;  %v756_v53 = vsel %vm394_vm6, %v734_v52, 0 }
 0x39c   :  { %358 = vrot.lane.b32.xlu2 %v349_v56, %s1620_s2  ;;  %1501 = vlog2.f32 %v311_v57  ;;  %v315_v1 = vadd.f32 1.0, %v314_v60  ;;  %vm318_vm5 = vcmp.lt.f32.partialorder %v317_v6, 0.0004427343  ;;  %v1479_v56 = vld [vmem:[%s2143_s4 + $0x4] ss:$0 sm:$0xff] }
 0x39d   :  { %v310_v63 = vsel %vm309_vm4, %v307_v59, %v304_v58 }
 0x39e   :  { %v322_v0 = vadd.f32 %v310_v63, %v266_v61  ;;  %v316_v2 = vmul.f32 %v1498_v54, %v315_v1  ;;  %v1456_v54 = vld [vmem:[%s2142_s3 + $0x3c] sm:$0xff] }
 0x39f   :  { %493 = vmatpush.bf16.msra.mxu1 %v1456_v54 }
 0x3a0   :  { %v326_v4 = vadd.f32 1e-06, %v322_v0 }
 0x3a2   :  { %v1502_v7 = vpop.eup %1501  ;;  %v350_v8 = vmul.f32 %v341_v62, %v326_v4 }
 0x3a3   :  { %v313_v9 = vmul.f32 0.6931472, %v1502_v7  ;;  %765 = vmatpush.bf16.msrb.mxu1 %v756_v53 }
 0x3a4   :  { %360 = vrot.lane.b32.xlu0 %v350_v8, %s1620_s2 }
 0x3a5   :  { %v319_v12 = vsel %vm318_vm5, %v316_v2, %v313_v9  ;;  %v505_v9 = vld [vmem:[%s2142_s3 + $0x70] sm:$0x3] }
 0x3a6   :  { %v323_v3 = vadd.f32 %v319_v12, %v267_v11  ;;  %v529_v2 = vsel %vm527_vm8, %v505_v9, 0  ;;  %v1480_v12 = vld [vmem:[%s2143_s4 + $0x5] ss:$0 sm:$0xff] }
 0x3a7   :  { %538 = vmatpush.bf16.msra.mxu0 %v529_v2 }
 0x3a8   :  { %v327_v14 = vadd.f32 1e-06, %v323_v3 }
 0x3aa   :  { %v351_v15 = vmul.f32 %v343_v13, %v327_v14 }
 0x3ab   :  { %830 = vmatpush.bf16.msrb.mxu0 %v1463_v17 }
 0x3ac   :  { %362 = vrot.lane.b32.xlu1 %v351_v15, %s1620_s2  ;;  %s1624_s2 = smov 44  }
 0x3af   :  { %831 = vmatpush.bf16.msrb.mxu0 %v1462_v18 }
 0x3ee   :  { %v357_v19 = vpop.permute.xlu2 %356 }
 0x3ef   :  { %v1767_v21 = vadd.f32 %v357_v19, %v1742_v5 }
 0x3f6   :  { %v359_v20 = vpop.permute.xlu2 %358 }
 0x3f7   :  { %v1770_v22 = vadd.f32 %v359_v20, %v1745_v10 }
 0x3f9   :  { %v1774_v23 = vpack.c.bf16 %v1770_v22, %v1767_v21 }
 0x3fb   :  { %1369 = vmatmul.msk.bf16.vlgmr.msrb.gmra.mxu2 %vm387_vm7, %v1774_v23  ;;  %v389_v43 = vsel %vm387_vm7, %v1774_v23, 0 }
 0x416   :  { %v361_v24 = vpop.permute.xlu0 %360 }
 0x417   :  { %v1779_v26 = vadd.f32 %v361_v24, %v1748_v16 }
 0x41e   :  { %v363_v25 = vpop.permute.xlu1 %362 }
 0x41f   :  { %v1782_v28 = vadd.f32 %v363_v25, %v1751_v27 }
 0x421   :  { %v1786_v29 = vpack.c.bf16 %v1782_v28, %v1779_v26 }
 0x423   :  { %1370 = vmatmul.msk.bf16.gmra.mxu2 %vm387_vm7, %v1786_v29  ;;  %v392_v42 = vsel %vm387_vm7, %v1786_v29, 0 }
 0x47e   :  { %v407_v34 = vpop.f32.mrf.mxu2 }
 0x47f   :  { %v408_v36 = vadd.f32 %v1478_v35, %v407_v34 }
 0x481   :  { %v417_v39 = vmax.f32 %v408_v36, 0.0 }
 0x486   :  { %v409_v37 = vpop.f32.mrf.mxu2 }
 0x487   :  { %v410_v38 = vadd.f32 %v1478_v35, %v409_v37 }
 0x489   :  { %v418_v40 = vmax.f32 %v410_v38, 0.0 }
 0x48b   :  { %v421_v41 = vpack.c.bf16 %v418_v40, %v417_v39 }
 0x48d   :  { %1379 = vmatmul.msk.bf16.vlgmr.msrb.gmra.mxu3 %vm56_vm0, %v421_v41 }
 0x48e   :  { %1209 = vmatpush.bf16.xpose.msrb.mxu3 %v392_v42 }
 0x496   :  { %1210 = vmatpush.bf16.xpose.msrb.mxu3 %v389_v43 }
 0x4a6   :  { %v412_v44 = vpop.f32.mrf.mxu2 }
 0x4a7   :  { %v413_v45 = vadd.f32 %v1478_v35, %v412_v44 }
 0x4a9   :  { %v419_v48 = vmax.f32 %v413_v45, 0.0 }
 0x4ae   :  { %v414_v46 = vpop.f32.mrf.mxu2 }
 0x4af   :  { %v415_v47 = vadd.f32 %v1478_v35, %v414_v46  ;;  %v1459_v46 = vld [vmem:[%s2142_s3 + $0x7c] sm:$0xff] }
 0x4b0   :  { %581 = vmatpush.bf16.msra.mxu2 %v1459_v46  ;;  %v1486_v46 = vld [vmem:[%s2143_s4 + $0xb] ss:$0 sm:$0xff] }
 0x4b1   :  { %v420_v49 = vmax.f32 %v415_v47, 0.0  ;;  %v1458_v47 = vld [vmem:[%s2142_s3 + $0x74] sm:$0xff] }
 0x4b3   :  { %v422_v50 = vpack.c.bf16 %v420_v49, %v419_v48  ;;  %v1482_v49 = vld [vmem:[%s2143_s4 + $0x9] ss:$0 sm:$0xff] }
 0x4b4   :  { %582 = vmatpush.bf16.msra.mxu2 %v1458_v47 }
 0x4b5   :  { %1380 = vmatmul.msk.bf16.gmra.mxu3 %vm56_vm0, %v422_v50 }
 0x510   :  { %v451_v55 = vpop.f32.mrf.mxu3 }
 0x511   :  { %v452_v57 = vadd.f32 %v1479_v56, %v451_v55 }
 0x513   :  { %v461_v60 = vmax.f32 %v452_v57, 0.0  ;;  %v1464_v57 = vld [vmem:[%s2142_s3 + $0x60] sm:$0xff] }
 0x518   :  { %v453_v58 = vpop.f32.mrf.mxu3 }
 0x519   :  { %v454_v59 = vadd.f32 %v1479_v56, %v453_v58 }
 0x51b   :  { %v462_v61 = vmax.f32 %v454_v59, 0.0 }
 0x51d   :  { %v465_v62 = vpack.c.bf16 %v462_v61, %v461_v60 }
 0x51f   :  { %1389 = vmatmul.msk.bf16.vlgmr.msra.gmra.mxu1 %vm56_vm0, %v465_v62 }
 0x538   :  { %v456_v63 = vpop.f32.mrf.mxu3 }
 0x539   :  { %v457_v0 = vadd.f32 %v1479_v56, %v456_v63 }
 0x53b   :  { %v463_v6 = vmax.f32 %v457_v0, 0.0 }
 0x540   :  { %v458_v1 = vpop.f32.mrf.mxu3 }
 0x541   :  { %v459_v4 = vadd.f32 %v1479_v56, %v458_v1  ;;  %v1465_v56 = vld [vmem:[%s2142_s3 + $0x68] sm:$0xff] }
 0x542   :  { %896 = vmatpush.bf16.msrb.mxu2 %v1465_v56 }
 0x543   :  { %v464_v7 = vmax.f32 %v459_v4, 0.0  ;;  %v1885_v4 = vld [vmem:[%s2143_s4 + $0x7] ss:$0 sm:$0xff] }
 0x545   :  { %v466_v8 = vpack.c.bf16 %v464_v7, %v463_v6 }
 0x546   :  { %897 = vmatpush.bf16.msrb.mxu2 %v1464_v57 }
 0x547   :  { %1390 = vmatmul.msk.bf16.gmra.mxu1 %vm56_vm0, %v466_v8 }
 0x557   :  { %1413 = vmatmul.msk.bf16.vlgmr.msrb.gmra.mxu1 %vm387_vm7, %v1774_v23 }
 0x567   :  { %1414 = vmatmul.msk.bf16.gmra.mxu1 %vm387_vm7, %v1786_v29 }
 0x59c   :  { %v495_v11 = vpop.f32.mrf.mxu1 }
 0x59d   :  { %v1836_v13 = vadd.f32 %v1480_v12, %v495_v11 }
 0x5a4   :  { %v497_v3 = vpop.f32.mrf.mxu1 }
 0x5a5   :  { %v1838_v14 = vadd.f32 %v1480_v12, %v497_v3 }
 0x5a7   :  { %v517_v15 = vpack.c.bf16 %v1838_v14, %v1836_v13 }
 0x5a9   :  { %1391 = vmatmul.msk.bf16.vlgmr.msra.gmra.mxu0 %vm520_vm9, %v517_v15 }
 0x5c4   :  { %v500_v19 = vpop.f32.mrf.mxu1 }
 0x5c5   :  { %v1848_v24 = vadd.f32 %v1480_v12, %v500_v19 }
 0x5cc   :  { %v502_v20 = vpop.f32.mrf.mxu1 }
 0x5cd   :  { %v1850_v25 = vadd.f32 %v1480_v12, %v502_v20 }
 0x5cf   :  { %v518_v30 = vpack.c.bf16 %v1850_v25, %v1848_v24 }
 0x5d1   :  { %1392 = vmatmul.msk.bf16.gmra.mxu0 %vm520_vm9, %v518_v30 }
 0x5d4   :  { %v767_v31 = vpop.f32.mrf.mxu1 }
 0x5d5   :  { %v768_v33 = vadd.f32 %v1857_v32, %v767_v31  ;;  %v1484_v31 = vld [vmem:[%s2143_s4 + $0xa] ss:$0 sm:$0xff] }
 0x5d7   :  { %v787_v36 = vmax.f32 %v768_v33, 0.0 }
 0x5dc   :  { %v769_v34 = vpop.f32.mrf.mxu1 }
 0x5dd   :  { %v770_v35 = vadd.f32 %v1857_v32, %v769_v34 }
 0x5df   :  { %v788_v37 = vmax.f32 %v770_v35, 0.0 }
 0x5e1   :  { %v795_v38 = vpack.c.bf16 %v788_v37, %v787_v36 }
 0x5e3   :  { %1425 = vmatmul.msk.bf16.vlgmr.msrb.gmra.mxu0 %vm56_vm0, %v795_v38 }
 0x5e4   :  { %v772_v39 = vpop.f32.mrf.mxu1 }
 0x5e5   :  { %v773_v40 = vadd.f32 %v1857_v32, %v772_v39 }
 0x5e7   :  { %v789_v43 = vmax.f32 %v773_v40, 0.0 }
 0x5ec   :  { %v774_v41 = vpop.f32.mrf.mxu1 }
 0x5ed   :  { %v775_v42 = vadd.f32 %v1857_v32, %v774_v41 }
 0x5ef   :  { %v790_v44 = vmax.f32 %v775_v42, 0.0 }
 0x5f1   :  { %v796_v45 = vpack.c.bf16 %v790_v44, %v789_v43 }
 0x5f3   :  { %1426 = vmatmul.msk.bf16.gmra.mxu0 %vm56_vm0, %v796_v45 }
 0x626   :  { %v540_v48 = vpop.f32.mrf.mxu0 }
 0x627   :  { %v541_v50 = vadd.f32 %v1482_v49, %v540_v48 }
 0x629   :  { %v550_v53 = vmax.f32 %v541_v50, 0.0 }
 0x62e   :  { %v542_v51 = vpop.f32.mrf.mxu0 }
 0x62f   :  { %v543_v52 = vadd.f32 %v1482_v49, %v542_v51 }
 0x631   :  { %v551_v54 = vmax.f32 %v543_v52, 0.0 }
 0x633   :  { %v554_v55 = vpack.c.bf16 %v551_v54, %v550_v53 }
 0x635   :  { %1401 = vmatmul.msk.bf16.vlgmr.msra.gmra.mxu2 %vm56_vm0, %v554_v55 }
 0x64e   :  { %v545_v58 = vpop.f32.mrf.mxu0 }
 0x64f   :  { %v546_v59 = vadd.f32 %v1482_v49, %v545_v58 }
 0x651   :  { %v552_v62 = vmax.f32 %v546_v59, 0.0 }
 0x656   :  { %v547_v60 = vpop.f32.mrf.mxu0 }
 0x657   :  { %v548_v61 = vadd.f32 %v1482_v49, %v547_v60 }
 0x659   :  { %v553_v63 = vmax.f32 %v548_v61, 0.0 }
 0x65b   :  { %v555_v0 = vpack.c.bf16 %v553_v63, %v552_v62 }
 0x65d   :  { %1402 = vmatmul.msk.bf16.gmra.mxu2 %vm56_vm0, %v555_v0 }
 0x660   :  { %v833_v1 = vpop.f32.mrf.mxu0 }
 0x661   :  { %v834_v6 = vadd.f32 %v1885_v4, %v833_v1 }
 0x663   :  { %v853_v9 = vmax.f32 %v834_v6, 0.0 }
 0x668   :  { %v835_v7 = vpop.f32.mrf.mxu0 }
 0x669   :  { %v836_v8 = vadd.f32 %v1885_v4, %v835_v7 }
 0x66b   :  { %v854_v2 = vmax.f32 %v836_v8, 0.0 }
 0x66d   :  { %v861_v11 = vpack.c.bf16 %v854_v2, %v853_v9 }
 0x66f   :  { %1437 = vmatmul.msk.bf16.vlgmr.msrb.gmra.mxu2 %vm56_vm0, %v861_v11 }
 0x670   :  { %v838_v12 = vpop.f32.mrf.mxu0 }
 0x671   :  { %v839_v3 = vadd.f32 %v1885_v4, %v838_v12 }
 0x673   :  { %v855_v18 = vmax.f32 %v839_v3, 0.0 }
 0x678   :  { %v840_v15 = vpop.f32.mrf.mxu0 }
 0x679   :  { %v841_v17 = vadd.f32 %v1885_v4, %v840_v15 }
 0x67b   :  { %v856_v19 = vmax.f32 %v841_v17, 0.0 }
 0x67d   :  { %v862_v20 = vpack.c.bf16 %v856_v19, %v855_v18 }
 0x67f   :  { %1438 = vmatmul.msk.bf16.gmra.mxu2 %vm56_vm0, %v862_v20 }
 0x6b8   :  { %v584_v30 = vpop.f32.mrf.mxu2 }
 0x6b9   :  { %v585_v33 = vadd.f32 %v1484_v31, %v584_v30 }
 0x6bb   :  { %v594_v36 = vmax.f32 %v585_v33, 0.0 }
 0x6c0   :  { %v586_v34 = vpop.f32.mrf.mxu2 }
 0x6c1   :  { %v587_v35 = vadd.f32 %v1484_v31, %v586_v34 }
 0x6c3   :  { %v595_v37 = vmax.f32 %v587_v35, 0.0 }
 0x6c5   :  { %v598_v38 = vpack.c.bf16 %v595_v37, %v594_v36 }
 0x6c7   :  { %1411 = vmatmul.msk.bf16.vlgmr.msra.gmra.mxu3 %vm56_vm0, %v598_v38 }
 0x6e0   :  { %v589_v39 = vpop.f32.mrf.mxu2 }
 0x6e1   :  { %v590_v40 = vadd.f32 %v1484_v31, %v589_v39 }
 0x6e3   :  { %v596_v43 = vmax.f32 %v590_v40, 0.0 }
 0x6e8   :  { %v591_v41 = vpop.f32.mrf.mxu2 }
 0x6e9   :  { %v592_v42 = vadd.f32 %v1484_v31, %v591_v41  ;;  %v1925_v41 = vld [vmem:[%s2143_s4 + $0x8] ss:$0 sm:$0xff]  ;;  %s1621_s4 = smov 16  }
 0x6eb   :  { %v597_v44 = vmax.f32 %v592_v42, 0.0 }
 0x6ed   :  { %v599_v45 = vpack.c.bf16 %v597_v44, %v596_v43 }
 0x6ef   :  { %1412 = vmatmul.msk.bf16.gmra.mxu3 %vm56_vm0, %v599_v45 }
 0x6f2   :  { %v899_v19 = vpop.f32.mrf.mxu2 }
 0x6f3   :  { %v900_v43 = vadd.f32 %v1925_v41, %v899_v19 }
 0x6f5   :  { %v919_v44 = vsel %vm94_vm1, %v900_v43, -inf }
 0x6fa   :  { %v901_v34 = vpop.f32.mrf.mxu2 }
 0x6ff   :  { %1441 = vmatmul.msk.bf16.vlgmr.msrb.gmra.mxu3 %vm387_vm7, %v1774_v23 }
 0x702   :  { %v904_v40 = vpop.f32.mrf.mxu2 }
 0x70a   :  { %v906_v45 = vpop.f32.mrf.mxu2 }
 0x70f   :  { %1442 = vmatmul.msk.bf16.gmra.mxu3 %vm387_vm7, %v1786_v29 }
 0x74a   :  { %v628_v47 = vpop.f32.mrf.mxu3 }
 0x74b   :  { %v629_v48 = vadd.f32 %v1486_v46, %v628_v47 }
 0x74d   :  { %v638_v49 = vsel %vm387_vm7, %v629_v48, -inf }
 0x74e   :  { %639 = vmax.xlane.f32.xlu2 %v638_v49 }
 0x752   :  { %v630_v50 = vpop.f32.mrf.mxu3 }
 0x753   :  { %v631_v51 = vadd.f32 %v1486_v46, %v630_v50 }
 0x755   :  { %v641_v52 = vsel %vm387_vm7, %v631_v51, -inf }
 0x756   :  { %642 = vmax.xlane.f32.xlu0 %v641_v52 }
 0x772   :  { %v633_v53 = vpop.f32.mrf.mxu3 }
 0x773   :  { %v634_v54 = vadd.f32 %v1486_v46, %v633_v53 }
 0x775   :  { %v644_v23 = vsel %vm387_vm7, %v634_v54, -inf }
 0x776   :  { %645 = vmax.xlane.f32.xlu1 %v644_v23 }
 0x77a   :  { %v635_v29 = vpop.f32.mrf.mxu3 }
 0x77b   :  { %v1908_v55 = vadd.f32 %v1486_v46, %v635_v29  ;;  %v1932_v46 = vadd.f32 %v1925_v41, %v906_v45 }
 0x77d   :  { %v647_v56 = vsel %vm387_vm7, %v1908_v55, -inf  ;;  %v928_v47 = vsel %vm94_vm1, %v1932_v46, -inf }
 0x77e   :  { %648 = vmax.xlane.f32.xlu2 %v647_v56  ;;  %v1942_v56 = vadd.f32 %v1925_v41, %v901_v34 }
 0x782   :  { %v1212_v57 = vpop.f32.mrf.mxu3 }
 0x783   :  { %v1222_v58 = vmul.f32 0.5, %v1212_v57 }
 0x785   :  { %1503 = vtanh.f32 %v1222_v58 }
 0x78a   :  { %v1214_v59 = vpop.f32.mrf.mxu3 }
 0x78b   :  { %v1504_v60 = vpop.eup %1503  ;;  %v1223_v61 = vmul.f32 0.5, %v1214_v59 }
 0x78c   :  { %v1230_v62 = vmul.f32 0.5, %v1504_v60 }
 0x78d   :  { %1505 = vtanh.f32 %v1223_v61 }
 0x78e   :  { %v1234_v63 = vadd.f32 0.5, %v1230_v62 }
 0x790   :  { %1238 = vst.msk [vmem:[#allocation2] sm:$0xff] %vm56_vm0, %v1234_v63 }
 0x792   :  { %v1217_v0 = vpop.f32.mrf.mxu3 }
 0x793   :  { %v1506_v1 = vpop.eup %1505  ;;  %v1224_v6 = vmul.f32 0.5, %v1217_v0 }
 0x794   :  { %v1231_v7 = vmul.f32 0.5, %v1506_v1 }
 0x795   :  { %1507 = vtanh.f32 %v1224_v6 }
 0x796   :  { %v1235_v8 = vadd.f32 0.5, %v1231_v7 }
 0x798   :  { %1239 = vst.msk [vmem:[#allocation2 + $0x8] sm:$0xff] %vm56_vm0, %v1235_v8 }
 0x79a   :  { %v1219_v9 = vpop.f32.mrf.mxu3 }
 0x79b   :  { %v1508_v2 = vpop.eup %1507  ;;  %v1225_v11 = vmul.f32 0.5, %v1219_v9 }
 0x79c   :  { %v1232_v12 = vmul.f32 0.5, %v1508_v2 }
 0x79d   :  { %1509 = vtanh.f32 %v1225_v11 }
 0x79e   :  { %v1236_v3 = vadd.f32 0.5, %v1232_v12 }
 0x7a0   :  { %1240 = vst.msk [vmem:[#allocation2 + $0x10] sm:$0xff] %vm56_vm0, %v1236_v3 }
 0x7a3   :  { %v1510_v15 = vpop.eup %1509 }
 0x7a4   :  { %v1233_v17 = vmul.f32 0.5, %v1510_v15 }
 0x7a6   :  { %v1237_v18 = vadd.f32 0.5, %v1233_v17 }
 0x7a8   :  { %1241 = vst.msk [vmem:[#allocation2 + $0x18] sm:$0xff] %vm56_vm0, %v1237_v18 }
 0x7a9   :  { %1295 = dma.vmem_to_hbm [thread:$0]  %s1288_s9, 512, %s1290_s11, [#allocation3], %s1627_s14, %s1627_s14, %s1619_s25  }
 0x7c1   :  { %v640_v20 = vpop.xlane.xlu2 %639 }
 0x7c2   :  { %v650_v30 = vsub.f32 %v629_v48, %v640_v20 }
 0x7c4   :  { %v654_v31 = vmul.f32 1.442695, %v650_v30 }
 0x7c6   :  { %1511 = vpow2.f32 %v654_v31 }
 0x7c9   :  { %v643_v33 = vpop.xlane.xlu0 %642 }
 0x7ca   :  { %v651_v35 = vsub.f32 %v631_v51, %v643_v33 }
 0x7cc   :  { %v1916_v36 = vpop.eup %1511  ;;  %v656_v37 = vmul.f32 1.442695, %v651_v35 }
 0x7cd   :  { %v662_v38 = vsel %vm387_vm7, %v1916_v36, 0.0 }
 0x7ce   :  { %1513 = vpow2.f32 %v656_v37  ;;  %663 = vadd.xlane.f32.xlu2 %v662_v38 }
 0x7d4   :  { %v1920_v39 = vpop.eup %1513 }
 0x7d5   :  { %v665_v42 = vsel %vm387_vm7, %v1920_v39, 0.0 }
 0x7d6   :  { %666 = vadd.xlane.f32.xlu0 %v665_v42 }
 0x7de   :  { %920 = vmax.xlane.f32.xlu0 %v919_v44 }
 0x7e6   :  { %929 = vmax.xlane.f32.xlu0 %v928_v47 }
 0x7e9   :  { %v646_v48 = vpop.xlane.xlu1 %645 }
 0x7ea   :  { %v652_v49 = vsub.f32 %v634_v54, %v646_v48  ;;  %v922_v54 = vsel %vm94_vm1, %v1942_v56, -inf }
 0x7ec   :  { %v658_v50 = vmul.f32 1.442695, %v652_v49 }
 0x7ee   :  { %1515 = vpow2.f32 %v658_v50 }
 0x7f1   :  { %v649_v51 = vpop.xlane.xlu2 %648 }
 0x7f2   :  { %v653_v52 = vsub.f32 %v1908_v55, %v649_v51  ;;  %v1951_v55 = vadd.f32 %v1925_v41, %v904_v40 }
 0x7f4   :  { %v1937_v53 = vpop.eup %1515  ;;  %v660_v23 = vmul.f32 1.442695, %v653_v52  ;;  %v925_v59 = vsel %vm94_vm1, %v1951_v55, -inf }
 0x7f5   :  { %v668_v29 = vsel %vm387_vm7, %v1937_v53, 0.0 }
 0x7f6   :  { %1517 = vpow2.f32 %v660_v23  ;;  %669 = vadd.xlane.f32.xlu1 %v668_v29 }
 0x7fc   :  { %v1944_v57 = vpop.eup %1517 }
 0x7fd   :  { %v671_v58 = vsel %vm387_vm7, %v1944_v57, 0.0 }
 0x7fe   :  { %923 = vmax.xlane.f32.xlu1 %v922_v54  ;;  %672 = vadd.xlane.f32.xlu2 %v671_v58 }
 0x806   :  { %926 = vmax.xlane.f32.xlu2 %v925_v59 }
 0x841   :  { %v664_v60 = vpop.xlane.xlu2 %663 }
 0x842   :  { %1519 = vrcp.f32 %v664_v60  ;;  %v685_v2 = vand.u32 2147483648, %v664_v60  ;;  %vm679_vm11 = vweird.f32 %v664_v60  ;;  %v683_v12 = vand.u32 2147483647, %v664_v60 }
 0x844   :  { %v686_v30 = vor.u32 1.1754944e-38, %v685_v2  ;;  %vm684_vm14 = vcmp.eq.f32.partialorder %v683_v12, 8.507059e+37 }
 0x848   :  { %v1520_v61 = vpop.eup %1519 }
 0x849   :  { %v675_v62 = vmul.f32 %v1520_v61, %v664_v60  ;;  %v667_v63 = vpop.xlane.xlu0 %666  ;;  %vm680_vm10 = vweird.f32 %v1520_v61 }
 0x84a   :  { %1521 = vrcp.f32 %v667_v63  ;;  %vm681_vm12 = vmor %vm679_vm11, %vm680_vm10  ;;  %v699_v15 = vand.u32 2147483648, %v667_v63  ;;  %v697_v19 = vand.u32 2147483647, %v667_v63  ;;  %vm693_vm15 = vweird.f32 %v667_v63 }
 0x84b   :  { %v676_v0 = vsub.f32 1.0, %v675_v62 }
 0x84c   :  { %v700_v33 = vor.u32 1.1754944e-38, %v699_v15  ;;  %vm698_vm3 = vcmp.eq.f32.partialorder %v697_v19, 8.507059e+37 }
 0x84d   :  { %v677_v1 = vmul.f32 %v1520_v61, %v676_v0 }
 0x84f   :  { %v678_v7 = vadd.f32 %v1520_v61, %v677_v1 }
 0x850   :  { %v1522_v6 = vpop.eup %1521 }
 0x851   :  { %v689_v8 = vmul.f32 %v1522_v6, %v667_v63  ;;  %v921_v9 = vpop.xlane.xlu0 %920  ;;  %vm694_vm13 = vweird.f32 %v1522_v6  ;;  %v682_v20 = vsel %vm681_vm12, %v1520_v61, %v678_v7 }
 0x852   :  { %v943_v11 = vsub.f32 %v900_v43, %v921_v9  ;;  %vm695_vm2 = vmor %vm693_vm15, %vm694_vm13  ;;  %v687_v34 = vsel %vm684_vm14, %v686_v30, %v682_v20 }
 0x853   :  { %v690_v3 = vsub.f32 1.0, %v689_v8  ;;  %v730_v42 = vmul.f32 %v1916_v36, %v687_v34 }
 0x854   :  { %v951_v17 = vmul.f32 1.442695, %v943_v11 }
 0x855   :  { %v691_v18 = vmul.f32 %v1522_v6, %v690_v3 }
 0x856   :  { %1523 = vpow2.f32 %v951_v17 }
 0x857   :  { %v692_v31 = vadd.f32 %v1522_v6, %v691_v18 }
 0x859   :  { %v930_v35 = vpop.xlane.xlu0 %929  ;;  %v696_v37 = vsel %vm695_vm2, %v1522_v6, %v692_v31 }
 0x85a   :  { %v946_v38 = vsub.f32 %v1932_v46, %v930_v35  ;;  %v701_v40 = vsel %vm698_vm3, %v700_v33, %v696_v37 }
 0x85b   :  { %v731_v43 = vmul.f32 %v1920_v39, %v701_v40 }
 0x85c   :  { %v1958_v44 = vpop.eup %1523  ;;  %v957_v45 = vmul.f32 1.442695, %v946_v38 }
 0x85d   :  { %v967_v47 = vsel %vm94_vm1, %v1958_v44, 0.0  ;;  %v746_v48 = vpack.c.bf16 %v731_v43, %v730_v42 }
 0x85e   :  { %1525 = vpow2.f32 %v957_v45  ;;  %968 = vadd.xlane.f32.xlu2 %v967_v47 }
 0x85f   :  { %1415 = vmatmul.msk.bf16.gmra.mxu1 %vm387_vm7, %v746_v48  ;;  %v750_v38 = vsel %vm387_vm7, %v746_v48, 0 }
 0x864   :  { %v1963_v49 = vpop.eup %1525 }
 0x865   :  { %v976_v46 = vsel %vm94_vm1, %v1963_v49, 0.0 }
 0x866   :  { %977 = vadd.xlane.f32.xlu2 %v976_v46 }
 0x869   :  { %v670_v36 = vpop.xlane.xlu1 %669 }
 0x86a   :  { %1527 = vrcp.f32 %v670_v36  ;;  %v713_v63 = vand.u32 2147483648, %v670_v36  ;;  %vm707_vm5 = vweird.f32 %v670_v36  ;;  %v711_v1 = vand.u32 2147483647, %v670_v36 }
 0x86c   :  { %v714_v3 = vor.u32 1.1754944e-38, %v713_v63  ;;  %vm712_vm9 = vcmp.eq.f32.partialorder %v711_v1, 8.507059e+37 }
 0x870   :  { %v1528_v39 = vpop.eup %1527 }
 0x871   :  { %v703_v50 = vmul.f32 %v1528_v39, %v670_v36  ;;  %v924_v51 = vpop.xlane.xlu1 %923  ;;  %v673_v52 = vpop.xlane.xlu2 %672  ;;  %vm708_vm4 = vweird.f32 %v1528_v39 }
 0x872   :  { %v944_v23 = vsub.f32 %v1942_v56, %v924_v51  ;;  %1529 = vrcp.f32 %v673_v52  ;;  %vm1971_vm6 = vmor %vm707_vm5, %vm708_vm4  ;;  %v725_v8 = vand.u32 2147483647, %v673_v52  ;;  %v727_v9 = vand.u32 2147483648, %v673_v52 }
 0x873   :  { %v704_v29 = vsub.f32 1.0, %v703_v50  ;;  %vm721_vm10 = vweird.f32 %v673_v52 }
 0x874   :  { %v953_v54 = vmul.f32 1.442695, %v944_v23  ;;  %v728_v17 = vor.u32 1.1754944e-38, %v727_v9  ;;  %vm726_vm12 = vcmp.eq.f32.partialorder %v725_v8, 8.507059e+37 }
 0x875   :  { %v705_v58 = vmul.f32 %v1528_v39, %v704_v29 }
 0x876   :  { %1531 = vpow2.f32 %v953_v54 }
 0x877   :  { %v706_v60 = vadd.f32 %v1528_v39, %v705_v58 }
 0x878   :  { %v1530_v59 = vpop.eup %1529 }
 0x879   :  { %v717_v61 = vmul.f32 %v1530_v59, %v673_v52  ;;  %v927_v62 = vpop.xlane.xlu2 %926  ;;  %vm722_vm8 = vweird.f32 %v1530_v59 }
 0x87a   :  { %v945_v0 = vsub.f32 %v1951_v55, %v927_v62  ;;  %v710_v55 = vsel %vm1971_vm6, %v1528_v39, %v706_v60  ;;  %vm723_vm11 = vmor %vm721_vm10, %vm722_vm8 }
 0x87b   :  { %v718_v6 = vsub.f32 1.0, %v717_v61  ;;  %v715_v18 = vsel %vm712_vm9, %v714_v3, %v710_v55 }
 0x87c   :  { %v1969_v7 = vpop.eup %1531  ;;  %v955_v2 = vmul.f32 1.442695, %v945_v0  ;;  %v732_v30 = vmul.f32 %v1937_v53, %v715_v18 }
 0x87d   :  { %v719_v11 = vmul.f32 %v1530_v59, %v718_v6  ;;  %v970_v12 = vsel %vm94_vm1, %v1969_v7, 0.0 }
 0x87e   :  { %1533 = vpow2.f32 %v955_v2  ;;  %971 = vadd.xlane.f32.xlu0 %v970_v12 }
 0x87f   :  { %v720_v15 = vadd.f32 %v1530_v59, %v719_v11 }
 0x881   :  { %v724_v19 = vsel %vm723_vm11, %v1530_v59, %v720_v15 }
 0x882   :  { %v729_v20 = vsel %vm726_vm12, %v728_v17, %v724_v19 }
 0x883   :  { %v733_v31 = vmul.f32 %v1944_v57, %v729_v20 }
 0x884   :  { %v1981_v33 = vpop.eup %1533 }
 0x885   :  { %v973_v34 = vsel %vm94_vm1, %v1981_v33, 0.0  ;;  %v747_v35 = vpack.c.bf16 %v733_v31, %v732_v30 }
 0x886   :  { %974 = vadd.xlane.f32.xlu1 %v973_v34 }
 0x887   :  { %1416 = vmatmul.msk.bf16.gmra.mxu1 %vm387_vm7, %v747_v35  ;;  %v753_v37 = vsel %vm387_vm7, %v747_v35, 0 }
 0x888   :  { %1248 = vmatpush.bf16.xpose.msra.mxu3 %v753_v37 }
 0x890   :  { %1249 = vmatpush.bf16.xpose.msra.mxu3 %v750_v38 }
 0x897   :  { %1443 = vmatmul.msk.bf16.vlgmr.msra.gmra.mxu3 %vm387_vm7, %v746_v48 }
 0x89f   :  { %1115 = vrot.lane.b32.xlu1 %v1767_v21, %s1621_s4 }
 0x8a7   :  { %1444 = vmatmul.msk.bf16.gmra.mxu3 %vm387_vm7, %v747_v35 }
 0x8dc   :  { %v777_v53 = vpop.f32.mrf.mxu1 }
 0x8dd   :  { %v778_v57 = vadd.f32 %v1857_v32, %v777_v53 }
 0x8df   :  { %v791_v43 = vmax.f32 %v778_v57, 0.0 }
 0x8e4   :  { %v779_v40 = vpop.f32.mrf.mxu1 }
 0x8e5   :  { %v780_v42 = vadd.f32 %v1857_v32, %v779_v40 }
 0x8e7   :  { %v792_v45 = vmax.f32 %v780_v42, 0.0 }
 0x8e9   :  { %v797_v47 = vpack.c.bf16 %v792_v45, %v791_v43 }
 0x8eb   :  { %1427 = vmatmul.msk.bf16.gmra.mxu0 %vm56_vm0, %v797_v47 }
 0x904   :  { %v782_v46 = vpop.f32.mrf.mxu1 }
 0x905   :  { %v783_v48 = vadd.f32 %v1857_v32, %v782_v46 }
 0x907   :  { %v793_v21 = vmax.f32 %v783_v48, 0.0 }
 0x90c   :  { %v784_v36 = vpop.f32.mrf.mxu1 }
 0x90d   :  { %v785_v39 = vadd.f32 %v1857_v32, %v784_v36 }
 0x90f   :  { %v794_v50 = vmax.f32 %v785_v39, 0.0 }
 0x911   :  { %v798_v51 = vpack.c.bf16 %v794_v50, %v793_v21  ;;  %v2022_v50 = vpop.xlane.xlu1 %974 }
 0x912   :  { %vm1024_vm10 = vweird.f32 %v2022_v50 }
 0x913   :  { %1428 = vmatmul.msk.bf16.gmra.mxu0 %vm56_vm0, %v798_v51 }
 0x919   :  { %v2026_v51 = vpop.permute.xlu1 %1115 }
 0x91a   :  { %v1251_v52 = vpop.f32.mrf.mxu3 }
 0x91b   :  { %v1261_v23 = vmul.f32 0.5, %v1251_v52 }
 0x91d   :  { %1535 = vtanh.f32 %v1261_v23 }
 0x922   :  { %v1253_v29 = vpop.f32.mrf.mxu3 }
 0x923   :  { %v1536_v54 = vpop.eup %1535  ;;  %v1262_v58 = vmul.f32 0.5, %v1253_v29 }
 0x924   :  { %v1269_v59 = vmul.f32 0.5, %v1536_v54 }
 0x925   :  { %1537 = vtanh.f32 %v1262_v58 }
 0x926   :  { %v1273_v60 = vadd.f32 0.5, %v1269_v59 }
 0x928   :  { %1277 = vst.msk [vmem:[#allocation4] sm:$0xff] %vm56_vm0, %v1273_v60  ;;  %v972_v60 = vpop.xlane.xlu0 %971 }
 0x929   :  { %vm1010_vm7 = vweird.f32 %v972_v60 }
 0x92a   :  { %v1256_v61 = vpop.f32.mrf.mxu3 }
 0x92b   :  { %v1538_v62 = vpop.eup %1537  ;;  %v1263_v63 = vmul.f32 0.5, %v1256_v61 }
 0x92c   :  { %v1270_v32 = vmul.f32 0.5, %v1538_v62 }
 0x92d   :  { %1539 = vtanh.f32 %v1263_v63 }
 0x92e   :  { %v1274_v0 = vadd.f32 0.5, %v1270_v32 }
 0x930   :  { %1278 = vst.msk [vmem:[#allocation4 + $0x8] sm:$0xff] %vm56_vm0, %v1274_v0 }
 0x932   :  { %v1258_v1 = vpop.f32.mrf.mxu3 }
 0x933   :  { %v1540_v6 = vpop.eup %1539  ;;  %v1264_v56 = vmul.f32 0.5, %v1258_v1 }
 0x934   :  { %v1271_v8 = vmul.f32 0.5, %v1540_v6 }
 0x935   :  { %1541 = vtanh.f32 %v1264_v56 }
 0x936   :  { %v1275_v9 = vadd.f32 0.5, %v1271_v8 }
 0x938   :  { %1279 = vst.msk [vmem:[#allocation4 + $0x10] sm:$0xff] %vm56_vm0, %v1275_v9  ;;  %v1016_v9 = vand.u32 2147483648, %v972_v60 }
 0x93b   :  { %v1542_v2 = vpop.eup %1541 }
 0x93c   :  { %v1272_v11 = vmul.f32 0.5, %v1542_v2 }
 0x93e   :  { %v1276_v12 = vadd.f32 0.5, %v1272_v11  ;;  %v1014_v11 = vand.u32 2147483647, %v972_v60 }
 0x940   :  { %1280 = vst.msk [vmem:[#allocation4 + $0x18] sm:$0xff] %vm56_vm0, %v1276_v12  ;;  %vm1015_vm14 = vcmp.eq.f32.partialorder %v1014_v11, 8.507059e+37 }
 0x941   :  { %1308 = dma.vmem_to_hbm [thread:$0]  %s1301_s13, 512, %s1303_s16, [#allocation5], %s1627_s14, %s1627_s14, %s1619_s25  }
 0x968   :  { %v843_v55 = vpop.f32.mrf.mxu0 }
 0x969   :  { %v844_v3 = vadd.f32 %v1885_v4, %v843_v55  ;;  %v1017_v55 = vor.u32 1.1754944e-38, %v1016_v9 }
 0x96b   :  { %v857_v18 = vmax.f32 %v844_v3, 0.0 }
 0x970   :  { %v845_v15 = vpop.f32.mrf.mxu0 }
 0x971   :  { %v846_v17 = vadd.f32 %v1885_v4, %v845_v15 }
 0x973   :  { %v858_v19 = vmax.f32 %v846_v17, 0.0 }
 0x975   :  { %v863_v20 = vpack.c.bf16 %v858_v19, %v857_v18 }
 0x977   :  { %1439 = vmatmul.msk.bf16.gmra.mxu2 %vm56_vm0, %v863_v20 }
 0x990   :  { %v848_v30 = vpop.f32.mrf.mxu0 }
 0x991   :  { %v849_v31 = vadd.f32 %v1885_v4, %v848_v30 }
 0x993   :  { %v859_v37 = vmax.f32 %v849_v31, 0.0 }
 0x998   :  { %v850_v34 = vpop.f32.mrf.mxu0 }
 0x999   :  { %v851_v35 = vadd.f32 %v1885_v4, %v850_v34 }
 0x99b   :  { %v860_v38 = vmax.f32 %v851_v35, 0.0 }
 0x99d   :  { %v864_v53 = vpack.c.bf16 %v860_v38, %v859_v37 }
 0x99f   :  { %1440 = vmatmul.msk.bf16.gmra.mxu2 %vm56_vm0, %v864_v53 }
 0x9fa   :  { %v909_v57 = vpop.f32.mrf.mxu2 }
 0x9fb   :  { %v910_v40 = vadd.f32 %v1925_v41, %v909_v57 }
 0x9fd   :  { %v931_v42 = vsel %vm94_vm1, %v910_v40, -inf }
 0x9fe   :  { %932 = vmax.xlane.f32.xlu1 %v931_v42 }
 0xa02   :  { %v911_v43 = vpop.f32.mrf.mxu2 }
 0xa03   :  { %v912_v45 = vadd.f32 %v1925_v41, %v911_v43 }
 0xa05   :  { %v934_v47 = vsel %vm94_vm1, %v912_v45, -inf }
 0xa06   :  { %935 = vmax.xlane.f32.xlu2 %v934_v47 }
 0xa1e   :  { %1117 = vrot.lane.b32.xlu2 %v1770_v22, %s1621_s4  ;;  %v2024_v22 = vpop.xlane.xlu2 %968 }
 0xa1f   :  { %vm996_vm2 = vweird.f32 %v2024_v22  ;;  %v1000_v47 = vand.u32 2147483647, %v2024_v22 }
 0xa21   :  { %vm1001_vm4 = vcmp.eq.f32.partialorder %v1000_v47, 8.507059e+37 }
 0xa22   :  { %v914_v4 = vpop.f32.mrf.mxu2 }
 0xa23   :  { %v915_v46 = vadd.f32 %v1925_v41, %v914_v4 }
 0xa25   :  { %v937_v48 = vsel %vm94_vm1, %v915_v46, -inf }
 0xa26   :  { %938 = vmax.xlane.f32.xlu0 %v937_v48  ;;  %v2028_v52 = vpop.xlane.xlu2 %977 }
 0xa27   :  { %vm1038_vm6 = vweird.f32 %v2028_v52 }
 0xa2a   :  { %v916_v36 = vpop.f32.mrf.mxu2 }
 0xa2b   :  { %v917_v39 = vadd.f32 %v1925_v41, %v916_v36 }
 0xa2d   :  { %v940_v21 = vsel %vm94_vm1, %v917_v39, -inf }
 0xa2e   :  { %941 = vmax.xlane.f32.xlu1 %v940_v21 }
 0xa3a   :  { %1119 = vrot.lane.b32.xlu0 %v1779_v26, %s1621_s4 }
 0xa47   :  { %1121 = vrot.lane.b32.xlu1 %v1782_v28, %s1621_s4 }
 0xa71   :  { %v933_v23 = vpop.xlane.xlu1 %932 }
 0xa72   :  { %v947_v29 = vsub.f32 %v910_v40, %v933_v23 }
 0xa74   :  { %v959_v41 = vmul.f32 1.442695, %v947_v29  ;;  %v1044_v29 = vand.u32 2147483648, %v2028_v52 }
 0xa76   :  { %1543 = vpow2.f32 %v959_v41  ;;  %v1042_v41 = vand.u32 2147483647, %v2028_v52 }
 0xa78   :  { %vm1043_vm11 = vcmp.eq.f32.partialorder %v1042_v41, 8.507059e+37 }
 0xa79   :  { %v936_v54 = vpop.xlane.xlu2 %935 }
 0xa7a   :  { %v948_v58 = vsub.f32 %v912_v45, %v936_v54  ;;  %v1002_v45 = vand.u32 2147483648, %v2024_v22 }
 0xa7c   :  { %v2030_v59 = vpop.eup %1543  ;;  %v961_v26 = vmul.f32 1.442695, %v948_v58  ;;  %v1003_v36 = vor.u32 1.1754944e-38, %v1002_v45  ;;  %v1045_v58 = vor.u32 1.1754944e-38, %v1044_v29 }
 0xa7d   :  { %v979_v28 = vsel %vm94_vm1, %v2030_v59, 0.0 }
 0xa7e   :  { %1545 = vpow2.f32 %v961_v26  ;;  %980 = vadd.xlane.f32.xlu0 %v979_v28  ;;  %v1030_v26 = vand.u32 2147483648, %v2022_v50 }
 0xa7f   :  { %1547 = vrcp.f32 %v972_v60 }
 0xa84   :  { %v2034_v61 = vpop.eup %1545 }
 0xa85   :  { %v982_v62 = vsel %vm94_vm1, %v2034_v61, 0.0  ;;  %v1548_v63 = vpop.eup %1547 }
 0xa86   :  { %983 = vadd.xlane.f32.xlu1 %v982_v62  ;;  %v1006_v32 = vmul.f32 %v1548_v63, %v972_v60  ;;  %vm1011_vm0 = vweird.f32 %v1548_v63 }
 0xa87   :  { %vm1012_vm13 = vmor %vm1010_vm7, %vm1011_vm0 }
 0xa88   :  { %v1007_v0 = vsub.f32 1.0, %v1006_v32 }
 0xa8a   :  { %v1008_v1 = vmul.f32 %v1548_v63, %v1007_v0 }
 0xa8c   :  { %v1009_v8 = vadd.f32 %v1548_v63, %v1008_v1 }
 0xa8e   :  { %v1013_v12 = vsel %vm1012_vm13, %v1548_v63, %v1009_v8 }
 0xa8f   :  { %v1018_v17 = vsel %vm1015_vm14, %v1017_v55, %v1013_v12 }
 0xa90   :  { %v1104_v30 = vmul.f32 %v1969_v7, %v1018_v17 }
 0xa99   :  { %v939_v6 = vpop.xlane.xlu0 %938 }
 0xa9a   :  { %v949_v56 = vsub.f32 %v915_v46, %v939_v6 }
 0xa9c   :  { %v963_v2 = vmul.f32 1.442695, %v949_v56 }
 0xa9e   :  { %1549 = vpow2.f32 %v963_v2 }
 0xa9f   :  { %1135 = vrot.lane.b32.xlu1 %v1848_v24, %s1622_s30  ;;  %1551 = vrcp.f32 %v2024_v22 }
 0xaa1   :  { %v942_v3 = vpop.xlane.xlu1 %941 }
 0xaa2   :  { %v950_v15 = vsub.f32 %v917_v39, %v942_v3 }
 0xaa4   :  { %v2040_v18 = vpop.eup %1549  ;;  %v965_v19 = vmul.f32 1.442695, %v950_v15 }
 0xaa5   :  { %v985_v20 = vsel %vm94_vm1, %v2040_v18, 0.0  ;;  %v1552_v24 = vpop.eup %1551 }
 0xaa6   :  { %1553 = vpow2.f32 %v965_v19  ;;  %986 = vadd.xlane.f32.xlu2 %v985_v20  ;;  %v992_v35 = vmul.f32 %v1552_v24, %v2024_v22  ;;  %vm997_vm15 = vweird.f32 %v1552_v24 }
 0xaa7   :  { %1149 = vrot.lane.b32.xlu1 %v1104_v30, %s1623_s8  ;;  %1555 = vrcp.f32 %v2028_v52  ;;  %vm998_vm3 = vmor %vm996_vm2, %vm997_vm15 }
 0xaa8   :  { %1557 = vrcp.f32 %v2022_v50  ;;  %v993_v37 = vsub.f32 1.0, %v992_v35 }
 0xaaa   :  { %v994_v38 = vmul.f32 %v1552_v24, %v993_v37 }
 0xaac   :  { %v2047_v31 = vpop.eup %1553  ;;  %v995_v43 = vadd.f32 %v1552_v24, %v994_v38  ;;  %v2077_v32 = vpop.permute.xlu0 %1119 }
 0xaad   :  { %v988_v34 = vsel %vm94_vm1, %v2047_v31, 0.0  ;;  %v1556_v7 = vpop.eup %1555  ;;  %v2085_v38 = vpop.permute.xlu2 %1117 }
 0xaae   :  { %989 = vadd.xlane.f32.xlu0 %v988_v34  ;;  %v1034_v53 = vmul.f32 %v1556_v7, %v2028_v52  ;;  %v1558_v57 = vpop.eup %1557  ;;  %v999_v48 = vsel %vm998_vm3, %v1552_v24, %v995_v43  ;;  %vm1039_vm5 = vweird.f32 %v1556_v7  ;;  %v1031_v52 = vor.u32 1.1754944e-38, %v1030_v26 }
 0xaaf   :  { %v1020_v42 = vmul.f32 %v1558_v57, %v2022_v50  ;;  %v1004_v39 = vsel %vm1001_vm4, %v1003_v36, %v999_v48  ;;  %vm1040_vm8 = vmor %vm1038_vm6, %vm1039_vm5  ;;  %vm1025_vm9 = vweird.f32 %v1558_v57 }
 0xab0   :  { %v1035_v40 = vsub.f32 1.0, %v1034_v53  ;;  %v1103_v22 = vmul.f32 %v1958_v44, %v1004_v39  ;;  %vm1026_vm12 = vmor %vm1024_vm10, %vm1025_vm9 }
 0xab1   :  { %v1021_v46 = vsub.f32 1.0, %v1020_v42 }
 0xab2   :  { %v1036_v4 = vmul.f32 %v1556_v7, %v1035_v40 }
 0xab3   :  { %v1022_v21 = vmul.f32 %v1558_v57, %v1021_v46 }
 0xab4   :  { %v1037_v23 = vadd.f32 %v1556_v7, %v1036_v4 }
 0xab5   :  { %v1023_v54 = vadd.f32 %v1558_v57, %v1022_v21 }
 0xab7   :  { %v1027_v44 = vsel %vm1026_vm12, %v1558_v57, %v1023_v54 }
 0xabe   :  { %1133 = vrot.lane.b32.xlu2 %v1838_v14, %s1622_s30  ;;  %v1041_v14 = vsel %vm1040_vm8, %v1556_v7, %v1037_v23 }
 0xabf   :  { %v1046_v28 = vsel %vm1043_vm11, %v1045_v58, %v1041_v14 }
 0xac0   :  { %v1106_v60 = vmul.f32 %v1963_v49, %v1046_v28 }
 0xac2   :  { %1131 = vrot.lane.b32.xlu0 %v1836_v13, %s1622_s30  ;;  %v1028_v13 = vand.u32 2147483647, %v2022_v50  ;;  %v2079_v50 = vpop.permute.xlu1 %1121 }
 0xac4   :  { %vm1029_vm0 = vcmp.eq.f32.partialorder %v1028_v13, 8.507059e+37 }
 0xac5   :  { %v1032_v62 = vsel %vm1029_vm0, %v1031_v52, %v1027_v44 }
 0xac6   :  { %1147 = vrot.lane.b32.xlu2 %v1103_v22, %s1623_s8  ;;  %v1105_v63 = vmul.f32 %v1981_v33, %v1032_v62  ;;  %v1175_v62 = vsel %vm94_vm1, %v1742_v5, %v2026_v51  ;;  %v1176_v5 = vsel %vm94_vm1, %v1745_v10, %v2085_v38 }
 0xaca   :  { %1137 = vrot.lane.b32.xlu0 %v1850_v25, %s1622_s30 }
 0xace   :  { %1153 = vrot.lane.b32.xlu2 %v1106_v60, %s1623_s8 }
 0xad2   :  { %1151 = vrot.lane.b32.xlu0 %v1105_v63, %s1623_s8 }
 0xaf1   :  { %v981_v0 = vpop.xlane.xlu0 %980 }
 0xaf2   :  { %1559 = vrcp.f32 %v981_v0  ;;  %v1058_v49 = vand.u32 2147483648, %v981_v0  ;;  %v1056_v9 = vand.u32 2147483647, %v981_v0  ;;  %vm1052_vm13 = vweird.f32 %v981_v0 }
 0xaf4   :  { %v1059_v11 = vor.u32 1.1754944e-38, %v1058_v49  ;;  %vm1057_vm15 = vcmp.eq.f32.partialorder %v1056_v9, 8.507059e+37 }
 0xaf8   :  { %v1560_v1 = vpop.eup %1559 }
 0xaf9   :  { %v1048_v25 = vmul.f32 %v1560_v1, %v981_v0  ;;  %v984_v6 = vpop.xlane.xlu1 %983  ;;  %vm1053_vm7 = vweird.f32 %v1560_v1 }
 0xafa   :  { %1561 = vrcp.f32 %v984_v6  ;;  %vm1054_vm14 = vmor %vm1052_vm13, %vm1053_vm7  ;;  %v1072_v19 = vand.u32 2147483648, %v984_v6  ;;  %v1070_v30 = vand.u32 2147483647, %v984_v6  ;;  %vm1066_vm3 = vweird.f32 %v984_v6 }
 0xafb   :  { %v1049_v56 = vsub.f32 1.0, %v1048_v25  ;;  %vm1179_vm13 = vcmask 195584  }
 0xafc   :  { %v1073_v34 = vor.u32 1.1754944e-38, %v1072_v19  ;;  %vm1071_vm5 = vcmp.eq.f32.partialorder %v1070_v30, 8.507059e+37 }
 0xafd   :  { %v1050_v8 = vmul.f32 %v1560_v1, %v1049_v56 }
 0xaff   :  { %v1051_v2 = vadd.f32 %v1560_v1, %v1050_v8 }
 0xb00   :  { %v1562_v33 = vpop.eup %1561 }
 0xb01   :  { %v1062_v12 = vmul.f32 %v1562_v33, %v984_v6  ;;  %v1055_v55 = vsel %vm1054_vm14, %v1560_v1, %v1051_v2  ;;  %vm1067_vm2 = vweird.f32 %v1562_v33  ;;  %vm1189_vm14 = vcmask 359424  }
 0xb02   :  { %v1060_v3 = vsel %vm1057_vm15, %v1059_v11, %v1055_v55  ;;  %vm1068_vm4 = vmor %vm1066_vm3, %vm1067_vm2  ;;  %vm1184_vm15 = vcmask 228352   ;;  %vm1194_vm2 = vcmask 490496   ;;  %v1177_v11 = vsel %vm94_vm1, %v1748_v16, %v2077_v32 }
 0xb03   :  { %v1063_v15 = vsub.f32 1.0, %v1062_v12  ;;  %v1107_v17 = vmul.f32 %v2030_v59, %v1060_v3 }
 0xb05   :  { %v1064_v20 = vmul.f32 %v1562_v33, %v1063_v15  ;;  %1163 = vrot.lane.b32.xlu1 %v1107_v17, %s1624_s2  ;;  %v1178_v17 = vsel %vm94_vm1, %v1751_v27, %v2079_v50 }
 0xb07   :  { %v1065_v24 = vadd.f32 %v1562_v33, %v1064_v20 }
 0xb09   :  { %v1069_v35 = vsel %vm1068_vm4, %v1562_v33, %v1065_v24 }
 0xb0a   :  { %v1074_v37 = vsel %vm1071_vm5, %v1073_v34, %v1069_v35 }
 0xb0b   :  { %v1108_v7 = vmul.f32 %v2034_v61, %v1074_v37 }
 0xb0d   :  { %1165 = vrot.lane.b32.xlu0 %v1108_v7, %s1624_s2 }
 0xb11   :  { %v1136_v28 = vpop.permute.xlu1 %1135 }
 0xb12   :  { %v1182_v10 = vsel %vm1179_vm13, %v1177_v11, %v1136_v28 }
 0xb19   :  { %v987_v59 = vpop.xlane.xlu2 %986  ;;  %v1150_v60 = vpop.permute.xlu1 %1149 }
 0xb1a   :  { %1563 = vrcp.f32 %v987_v59  ;;  %v1086_v43 = vand.u32 2147483648, %v987_v59  ;;  %v1084_v47 = vand.u32 2147483647, %v987_v59  ;;  %vm1080_vm8 = vweird.f32 %v987_v59 }
 0xb1c   :  { %v1087_v48 = vor.u32 1.1754944e-38, %v1086_v43  ;;  %vm1085_vm10 = vcmp.eq.f32.partialorder %v1084_v47, 8.507059e+37 }
 0xb20   :  { %v1564_v53 = vpop.eup %1563 }
 0xb21   :  { %v1076_v57 = vmul.f32 %v1564_v53, %v987_v59  ;;  %v990_v40 = vpop.xlane.xlu0 %989  ;;  %vm1081_vm6 = vweird.f32 %v1564_v53  ;;  %v1134_v44 = vpop.permute.xlu2 %1133 }
 0xb22   :  { %1565 = vrcp.f32 %v990_v40  ;;  %vm1082_vm9 = vmor %vm1080_vm8, %vm1081_vm6  ;;  %v1100_v29 = vand.u32 2147483648, %v990_v40  ;;  %v1098_v41 = vand.u32 2147483647, %v990_v40  ;;  %vm1094_vm12 = vweird.f32 %v990_v40 }
 0xb23   :  { %v1077_v42 = vsub.f32 1.0, %v1076_v57  ;;  %v1181_v51 = vsel %vm1179_vm13, %v1176_v5, %v1134_v44 }
 0xb24   :  { %vm1099_vm7 = vcmp.eq.f32.partialorder %v1098_v41, 8.507059e+37  ;;  %v1186_v9 = vsel %vm1184_vm15, %v1181_v51, %v1150_v60 }
 0xb25   :  { %v1078_v45 = vmul.f32 %v1564_v53, %v1077_v42 }
 0xb27   :  { %v1079_v4 = vadd.f32 %v1564_v53, %v1078_v45 }
 0xb28   :  { %v1566_v46 = vpop.eup %1565 }
 0xb29   :  { %v1090_v61 = vmul.f32 %v1566_v46, %v990_v40  ;;  %v1083_v36 = vsel %vm1082_vm9, %v1564_v53, %v1079_v4  ;;  %vm1095_vm11 = vweird.f32 %v1566_v46  ;;  %v1148_v0 = vpop.permute.xlu2 %1147 }
 0xb2a   :  { %v1088_v39 = vsel %vm1085_vm10, %v1087_v48, %v1083_v36  ;;  %vm1096_vm0 = vmor %vm1094_vm12, %vm1095_vm11 }
 0xb2b   :  { %v1091_v21 = vsub.f32 1.0, %v1090_v61  ;;  %v1109_v23 = vmul.f32 %v2040_v18, %v1088_v39  ;;  %v1101_v18 = vor.u32 1.1754944e-38, %v1100_v29 }
 0xb2d   :  { %v1092_v22 = vmul.f32 %v1566_v46, %v1091_v21  ;;  %1167 = vrot.lane.b32.xlu2 %v1109_v23, %s1624_s2 }
 0xb2f   :  { %v1093_v14 = vadd.f32 %v1566_v46, %v1092_v22 }
 0xb31   :  { %v1097_v54 = vsel %vm1096_vm0, %v1566_v46, %v1093_v14  ;;  %v1154_v49 = vpop.permute.xlu2 %1153 }
 0xb32   :  { %v1102_v58 = vsel %vm1099_vm7, %v1101_v18, %v1097_v54 }
 0xb33   :  { %v1110_v26 = vmul.f32 %v2047_v31, %v1102_v58 }
 0xb34   :  { %v1132_v13 = vpop.permute.xlu0 %1131 }
 0xb35   :  { %1169 = vrot.lane.b32.xlu1 %v1110_v26, %s1624_s2  ;;  %v1180_v63 = vsel %vm1179_vm13, %v1175_v62, %v1132_v13 }
 0xb36   :  { %v1185_v25 = vsel %vm1184_vm15, %v1180_v63, %v1148_v0 }
 0xb3c   :  { %v1138_v52 = vpop.permute.xlu0 %1137 }
 0xb3d   :  { %v1183_v19 = vsel %vm1179_vm13, %v1178_v17, %v1138_v52 }
 0xb3e   :  { %v1188_v32 = vsel %vm1184_vm15, %v1183_v19, %v1154_v49 }
 0xb44   :  { %v1152_v1 = vpop.permute.xlu0 %1151 }
 0xb45   :  { %v1187_v12 = vsel %vm1184_vm15, %v1182_v10, %v1152_v1 }
 0xb77   :  { %v1164_v31 = vpop.permute.xlu1 %1163 }
 0xb78   :  { %v1190_v6 = vsel %vm1189_vm14, %v1185_v25, %v1164_v31 }
 0xb79   :  { %v1195_v56 = vsel %vm1194_vm2, %v1190_v6, 0.0 }
 0xb7a   :  { %1199 = vst [vmem:[%s2144_s5] sm:$0xff] %v1195_v56 }
 0xb7f   :  { %v1166_v8 = vpop.permute.xlu0 %1165 }
 0xb80   :  { %v1191_v2 = vsel %vm1189_vm14, %v1186_v9, %v1166_v8 }
 0xb81   :  { %v1196_v33 = vsel %vm1194_vm2, %v1191_v2, 0.0 }
 0xb82   :  { %1200 = vst [vmem:[%s2144_s5 + $0x8] sm:$0xff] %v1196_v33 }
 0xb87   :  { %v1168_v55 = vpop.permute.xlu2 %1167 }
 0xb88   :  { %v1192_v3 = vsel %vm1189_vm14, %v1187_v12, %v1168_v55 }
 0xb89   :  { %v1197_v15 = vsel %vm1194_vm2, %v1192_v3, 0.0 }
 0xb8a   :  { %1201 = vst [vmem:[%s2144_s5 + $0x10] sm:$0xff] %v1197_v15 }
 0xba7   :  { %v1170_v16 = vpop.permute.xlu1 %1169 }
 0xba8   :  { %v1193_v20 = vsel %vm1189_vm14, %v1188_v32, %v1170_v16 }
 0xba9   :  { %v1198_v30 = vsel %vm1194_vm2, %v1193_v20, 0.0 }
 0xbaa   :  { %1202 = vst [vmem:[%s2144_s5 + $0x18] sm:$0xff] %v1198_v30 }
 0xbab   :  { %1615 = dma.done.wait [#allocation3], 512  }
 0xbac   :  { %1616 = vsyncadd [#allocation3], 4294966784 }
 0xbad   :  { %1617 = dma.done.wait [#allocation5], 512  }
 0xbae   :  { %1618 = vsyncadd [#allocation5], 4294966784 }
 0xbaf   :  { %1319 = vsyncpa [#allocation3], 1 }
 0xbb0   :  { %1320 = vsyncpa [#allocation5], 1 }

</bundles_post_ra>
